<compile_context>
chip_gen: v7x
topology: tpu7x:2x2x1
jax: 0.10.0
libtpu: 0.0.40
codegen_flags: <defaults>
</compile_context>

<pallas_src>
import functools

import jax
import jax.numpy as jnp
from jax.experimental import pallas as pl
from jax.experimental.pallas import tpu as pltpu

# Coupling layer types, in order (matches NICEModel.layer1..layer4).
TYPES = ("odd", "even", "odd", "even")
N_COUPLING = len(TYPES)


def nice_kernel(n_layers,
                x0_ref, x1_ref,
                win_ref, bin_ref, wh_ref, bh_ref, wout_ref, bout_ref,
                es0_ref, es1_ref, out_ref):
    """One batch tile of the NICE forward pass.

    Block shapes (VMEM):
      x0_ref, x1_ref : (TB, half)                    f32 activations
      win_ref        : (4, half, hidden)             input Linear weights (in, out)
      bin_ref        : (4, 1, hidden)                f32 biases
      wh_ref         : (4, n_layers, hidden, hidden)
      bh_ref         : (4, n_layers, 1, hidden)
      wout_ref       : (4, hidden, half)
      bout_ref       : (4, 1, half)
      es0_ref        : (1, half)   exp(scaling_diag)[:half]   (precomputed)
      es1_ref        : (1, half)   exp(scaling_diag)[half:]   (precomputed)
      out_ref        : (TB, 2*half)

    Weights may be bf16 (recommended); dots accumulate in f32 via
    preferred_element_type, activations are cast to the weight dtype just
    before each MXU pass.
    """
    half = x0_ref.shape[-1]
    cdt = win_ref.dtype          # MXU operand dtype (bf16 or f32)
    x0 = x0_ref[...]
    x1 = x1_ref[...]

    def mlp(z, l):
        # ReLU_MLP: input Linear (no act), n_layers x (Linear+ReLU), output
        # Linear (no act).  Static ref slices keep live ranges to one layer's
        # operands; biases stay f32 and are added to the f32 accumulator.
        h = jnp.dot(z.astype(cdt), win_ref[l],
                    preferred_element_type=jnp.float32) + bin_ref[l]
        for k in range(n_layers):
            h = jnp.dot(h.astype(cdt), wh_ref[l, k],
                        preferred_element_type=jnp.float32) + bh_ref[l, k]
            h = jnp.maximum(h, 0.0)
        return jnp.dot(h.astype(cdt), wout_ref[l],
                       preferred_element_type=jnp.float32) + bout_ref[l]

    for l, type_ in enumerate(TYPES):
        if type_ == "odd":
            # y0 = x0 ; y1 = x1 + m(x0)
            x1 = x1 + mlp(x0, l)
        else:
            # y1 = x1 ; y0 = x0 + m(x1)
            x0 = x0 + mlp(x1, l)

    # diag(exp(s)) scaling; two direct lane-aligned half-writes (no concat,
    # no in-kernel slicing of the scale vector).
    out_ref[:, :half] = x0 * es0_ref[...]
    out_ref[:, half:] = x1 * es1_ref[...]


def _pick_block_b(B):
    """Largest MXU-friendly batch tile (<=1024) dividing B, megacore-aware."""
    block_b = B
    for cand in (1024, 512, 256, 128, 64, 32, 16, 8):
        if B % cand == 0:
            block_b = cand
            break
    # Give megacore (v7x 2 TCs) at least 2 grid steps when that does not
    # shrink the tile below a full 256-row MXU pass.
    while B // block_b < 2 and block_b % 2 == 0 and block_b > 256:
        block_b //= 2
    return block_b


def _vmem_limit_bytes():
    """Physical VMEM minus ~8 MiB headroom (compiler scratch / semaphores)."""
    try:
        cap = pltpu.get_tpu_info().vmem_capacity_bytes
    except Exception:
        cap = 64 * 1024 * 1024
    return int(max(32 * 1024 * 1024, cap - 8 * 1024 * 1024))


def nice_forward(x0, x1, params, n_layers, block_b=None,
                 weights_dtype=jnp.bfloat16, single_buffer_weights=True):
    B, half = x0.shape
    n_inputs = 2 * half

    if block_b is None:
        block_b = _pick_block_b(B)
    assert B % block_b == 0, "batch must be divisible by block_b"
    grid = (B // block_b,)

    # Hoist the transcendental: exp(scaling_diag) is a learned constant.
    # Pre-split so both in-kernel stores stay lane-aligned.
    exp_scale = jnp.exp(params["scale"])          # (1, n_inputs)
    es0 = exp_scale[:, :half]                     # (1, half)
    es1 = exp_scale[:, half:]                     # (1, half)

    # Cast weights at the pallas_call boundary so the VMEM-resident copies are
    # bf16 (biases stay f32; accumulation is f32 inside the kernel).
    win = params["win"].astype(weights_dtype)
    wh = params["wh"].astype(weights_dtype)
    wout = params["wout"].astype(weights_dtype)
    b_in, bh, bout = params["bin"], params["bh"], params["bout"]

    x0 = x0.astype(jnp.float32)
    x1 = x1.astype(jnp.float32)

    # Activation tiles walk the batch axis; weights use constant index maps
    # (same block every step -> DMA'd once, resident across batch tiles).
    x_spec = pl.BlockSpec((block_b, half), lambda i: (i, 0))
    kernel = functools.partial(nice_kernel, n_layers)
    args = (x0, x1, win, b_in, wh, bh, wout, bout, es0, es1)

    def build(use_single_buffer):
        def const_spec(a):
            kwargs = {}
            if use_single_buffer:
                # Block index never changes -> single buffer halves weight VMEM.
                kwargs["pipeline_mode"] = pl.Buffered(1)
            return pl.BlockSpec(a.shape, lambda i, _n=a.ndim: (0,) * _n, **kwargs)

        return pl.pallas_call(
            kernel,
            out_shape=jax.ShapeDtypeStruct((B, n_inputs), jnp.float32),
            grid=grid,
            in_specs=[x_spec, x_spec,
                      const_spec(win), const_spec(b_in),
                      const_spec(wh), const_spec(bh),
                      const_spec(wout), const_spec(bout),
                      const_spec(es0), const_spec(es1)],
            out_specs=pl.BlockSpec((block_b, n_inputs), lambda i: (i, 0)),
            compiler_params=pltpu.CompilerParams(
                dimension_semantics=("parallel",),
                vmem_limit_bytes=_vmem_limit_bytes()),
        )

    if single_buffer_weights:
        try:
            return build(True)(*args)
        except Exception:
            # pipeline_mode=Buffered(1) unsupported in this JAX build; fall
            # back to default double-buffered constant specs (same numerics).
            pass
    return build(False)(*args)


def init_params(key, n_inputs, n_layers, n_hiddens):
    """Deterministic init mimicking nn.Linear's U(-1/sqrt(fan_in), +1/sqrt(fan_in)).

    Weights are stored (in, out) so the kernel computes x @ W + b.
    Biases carry a broadcast axis so in-kernel ref slices are 2-D.
    """
    half = n_inputs // 2
    keys = jax.random.split(key, 6)

    def u(k, shape, fan_in):
        bound = 1.0 / jnp.sqrt(float(fan_in))
        return jax.random.uniform(k, shape, jnp.float32, -bound, bound)

    params = {
        "win":  u(keys[0], (N_COUPLING, half, n_hiddens), half),
        "bin":  u(keys[1], (N_COUPLING, 1, n_hiddens), half),
        "wh":   u(keys[2], (N_COUPLING, n_layers, n_hiddens, n_hiddens), n_hiddens),
        "bh":   u(keys[3], (N_COUPLING, n_layers, 1, n_hiddens), n_hiddens),
        "wout": u(keys[4], (N_COUPLING, n_hiddens, half), n_hiddens),
        "bout": u(keys[5], (N_COUPLING, 1, half), n_hiddens),
        # scaling_diag = torch.ones(n_inputs)
        "scale": jnp.ones((1, n_inputs), jnp.float32),
    }
    return params


def nice_forward_ref(x0, x1, params, n_layers):
    """Pure-JAX f32 reference for correctness checking."""
    win, b_in = params["win"], params["bin"]
    wh, bh = params["wh"], params["bh"]
    wout, bout = params["wout"], params["bout"]

    def mlp(z, l):
        h = z @ win[l] + b_in[l]
        for k in range(n_layers):
            h = jnp.maximum(h @ wh[l, k] + bh[l, k], 0.0)
        return h @ wout[l] + bout[l]

    for l, type_ in enumerate(TYPES):
        if type_ == "odd":
            x1 = x1 + mlp(x0, l)
        else:
            x0 = x0 + mlp(x1, l)
    ys = jnp.concatenate([x0, x1], axis=1)
    return ys * jnp.exp(params["scale"])


if __name__ == "__main__":
    # Small shapes consistent with the module: n_inputs=8 -> half=4,
    # n_layers=2 hidden ReLU layers, n_hiddens=32, batch=16 (2 batch tiles).
    # NOTE: these toy shapes never engage the MXU; perf tuning only makes
    # sense at real sizes (half, hidden >= 128, preferably 128/256-aligned).
    n_inputs, n_layers, n_hiddens, batch = 8, 2, 32, 16
    half = n_inputs // 2

    key = jax.random.PRNGKey(0)
    k_x0, k_x1, k_p = jax.random.split(key, 3)
    x0 = jax.random.normal(k_x0, (batch, half), jnp.float32)
    x1 = jax.random.normal(k_x1, (batch, half), jnp.float32)
    params = init_params(k_p, n_inputs, n_layers, n_hiddens)

    ref = nice_forward_ref(x0, x1, params, n_layers)

    # 1) f32-weight path: tight check against the pure-JAX reference.
    out_f32 = nice_forward(x0, x1, params, n_layers, block_b=8,
                           weights_dtype=jnp.float32)
    out_f32 = jax.block_until_ready(out_f32)
    assert out_f32.shape == (batch, n_inputs)
    assert jnp.allclose(out_f32, ref, atol=2e-5, rtol=2e-5), "f32 mismatch vs reference"

    # 2) bf16-weight path (production default): loosened tolerance per bf16
    #    weight rounding, f32 accumulation keeps it close.
    out_bf16 = nice_forward(x0, x1, params, n_layers, block_b=8,
                            weights_dtype=jnp.bfloat16)
    out_bf16 = jax.block_until_ready(out_bf16)
    assert out_bf16.shape == (batch, n_inputs)
    assert jnp.allclose(out_bf16, ref, atol=5e-2, rtol=5e-2), "bf16 mismatch vs reference"

    print("KERNEL_OK")
</pallas_src>

<mosaic_0001>
module attributes {stable_mosaic.version = 11 : i64} {
  func.func @nice_kernel(%arg0: i32, %arg1: memref<8x4xf32, #tpu.memory_space<vmem>>, %arg2: memref<8x4xf32, #tpu.memory_space<vmem>>, %arg3: memref<4x4x32xf32, #tpu.memory_space<vmem>>, %arg4: memref<4x1x32xf32, #tpu.memory_space<vmem>>, %arg5: memref<4x2x32x32xf32, #tpu.memory_space<vmem>>, %arg6: memref<4x2x1x32xf32, #tpu.memory_space<vmem>>, %arg7: memref<4x32x4xf32, #tpu.memory_space<vmem>>, %arg8: memref<4x1x4xf32, #tpu.memory_space<vmem>>, %arg9: memref<1x4xf32, #tpu.memory_space<vmem>>, %arg10: memref<1x4xf32, #tpu.memory_space<vmem>>, %arg11: memref<8x8xf32, #tpu.memory_space<vmem>>) attributes {dimension_semantics = [#tpu.dimension_semantics<parallel>], iteration_bounds = array<i64: 2>, scalar_prefetch = 0 : i64, scratch_operands = 0 : i64, tpu.core_type = #tpu.core_type<tc>, window_params = [{transform_indices = @transform_0, window_bounds = array<i64: 8, 4>}, {transform_indices = @transform_1, window_bounds = array<i64: 8, 4>}, {pipeline_mode = #tpu.pipeline_mode<synchronous>, transform_indices = @transform_2, window_bounds = array<i64: 4, 4, 32>}, {pipeline_mode = #tpu.pipeline_mode<synchronous>, transform_indices = @transform_3, window_bounds = array<i64: 4, 1, 32>}, {pipeline_mode = #tpu.pipeline_mode<synchronous>, transform_indices = @transform_4, window_bounds = array<i64: 4, 2, 32, 32>}, {pipeline_mode = #tpu.pipeline_mode<synchronous>, transform_indices = @transform_5, window_bounds = array<i64: 4, 2, 1, 32>}, {pipeline_mode = #tpu.pipeline_mode<synchronous>, transform_indices = @transform_6, window_bounds = array<i64: 4, 32, 4>}, {pipeline_mode = #tpu.pipeline_mode<synchronous>, transform_indices = @transform_7, window_bounds = array<i64: 4, 1, 4>}, {pipeline_mode = #tpu.pipeline_mode<synchronous>, transform_indices = @transform_8, window_bounds = array<i64: 1, 4>}, {pipeline_mode = #tpu.pipeline_mode<synchronous>, transform_indices = @transform_9, window_bounds = array<i64: 1, 4>}, {transform_indices = @transform_10, window_bounds = array<i64: 8, 8>}]} {
    %c0 = arith.constant 0 : index
    %c0_0 = arith.constant 0 : index
    %0 = vector.load %arg1[%c0, %c0_0] : memref<8x4xf32, #tpu.memory_space<vmem>>, vector<8x4xf32>
    %c0_1 = arith.constant 0 : index
    %c0_2 = arith.constant 0 : index
    %1 = vector.load %arg2[%c0_1, %c0_2] : memref<8x4xf32, #tpu.memory_space<vmem>>, vector<8x4xf32>
    %c0_3 = arith.constant 0 : index
    %c0_4 = arith.constant 0 : index
    %c0_5 = arith.constant 0 : index
    %2 = vector.load %arg3[%c0_3, %c0_4, %c0_5] : memref<4x4x32xf32, #tpu.memory_space<vmem>>, vector<1x4x32xf32>
    %3 = vector.shape_cast %2 : vector<1x4x32xf32> to vector<4x32xf32>
    %cst = arith.constant dense<0.000000e+00> : vector<8x32xf32>
    %4 = tpu.matmul %0, %3, %cst {dimension_numbers = #tpu.dot_dimension_numbers<[1], [0], [0], [1], [0, 0, 1, 1], [], []>} : vector<8x4xf32>, vector<4x32xf32>, vector<8x32xf32> -> vector<8x32xf32>
    %c0_6 = arith.constant 0 : index
    %c0_7 = arith.constant 0 : index
    %c0_8 = arith.constant 0 : index
    %5 = vector.load %arg4[%c0_6, %c0_7, %c0_8] : memref<4x1x32xf32, #tpu.memory_space<vmem>>, vector<1x1x32xf32>
    %6 = vector.shape_cast %5 : vector<1x1x32xf32> to vector<1x32xf32>
    %7 = vector.broadcast %6 : vector<1x32xf32> to vector<8x32xf32>
    %8 = arith.addf %4, %7 : vector<8x32xf32>
    %c0_9 = arith.constant 0 : index
    %c0_10 = arith.constant 0 : index
    %c0_11 = arith.constant 0 : index
    %c0_12 = arith.constant 0 : index
    %9 = vector.load %arg5[%c0_9, %c0_10, %c0_11, %c0_12] : memref<4x2x32x32xf32, #tpu.memory_space<vmem>>, vector<1x1x32x32xf32>
    %10 = vector.shape_cast %9 : vector<1x1x32x32xf32> to vector<32x32xf32>
    %cst_13 = arith.constant dense<0.000000e+00> : vector<8x32xf32>
    %11 = tpu.matmul %8, %10, %cst_13 {dimension_numbers = #tpu.dot_dimension_numbers<[1], [0], [0], [1], [0, 0, 1, 1], [], []>} : vector<8x32xf32>, vector<32x32xf32>, vector<8x32xf32> -> vector<8x32xf32>
    %c0_14 = arith.constant 0 : index
    %c0_15 = arith.constant 0 : index
    %c0_16 = arith.constant 0 : index
    %c0_17 = arith.constant 0 : index
    %12 = vector.load %arg6[%c0_14, %c0_15, %c0_16, %c0_17] : memref<4x2x1x32xf32, #tpu.memory_space<vmem>>, vector<1x1x1x32xf32>
    %13 = vector.shape_cast %12 : vector<1x1x1x32xf32> to vector<1x32xf32>
    %14 = vector.broadcast %13 : vector<1x32xf32> to vector<8x32xf32>
    %15 = arith.addf %11, %14 : vector<8x32xf32>
    %cst_18 = arith.constant 0.000000e+00 : f32
    %16 = vector.broadcast %cst_18 : f32 to vector<8x32xf32>
    %17 = arith.maximumf %15, %16 : vector<8x32xf32>
    %c0_19 = arith.constant 0 : index
    %c1 = arith.constant 1 : index
    %c0_20 = arith.constant 0 : index
    %c0_21 = arith.constant 0 : index
    %18 = vector.load %arg5[%c0_19, %c1, %c0_20, %c0_21] : memref<4x2x32x32xf32, #tpu.memory_space<vmem>>, vector<1x1x32x32xf32>
    %19 = vector.shape_cast %18 : vector<1x1x32x32xf32> to vector<32x32xf32>
    %cst_22 = arith.constant dense<0.000000e+00> : vector<8x32xf32>
    %20 = tpu.matmul %17, %19, %cst_22 {dimension_numbers = #tpu.dot_dimension_numbers<[1], [0], [0], [1], [0, 0, 1, 1], [], []>} : vector<8x32xf32>, vector<32x32xf32>, vector<8x32xf32> -> vector<8x32xf32>
    %c0_23 = arith.constant 0 : index
    %c1_24 = arith.constant 1 : index
    %c0_25 = arith.constant 0 : index
    %c0_26 = arith.constant 0 : index
    %21 = vector.load %arg6[%c0_23, %c1_24, %c0_25, %c0_26] : memref<4x2x1x32xf32, #tpu.memory_space<vmem>>, vector<1x1x1x32xf32>
    %22 = vector.shape_cast %21 : vector<1x1x1x32xf32> to vector<1x32xf32>
    %23 = vector.broadcast %22 : vector<1x32xf32> to vector<8x32xf32>
    %24 = arith.addf %20, %23 : vector<8x32xf32>
    %cst_27 = arith.constant 0.000000e+00 : f32
    %25 = vector.broadcast %cst_27 : f32 to vector<8x32xf32>
    %26 = arith.maximumf %24, %25 : vector<8x32xf32>
    %c0_28 = arith.constant 0 : index
    %c0_29 = arith.constant 0 : index
    %c0_30 = arith.constant 0 : index
    %27 = vector.load %arg7[%c0_28, %c0_29, %c0_30] : memref<4x32x4xf32, #tpu.memory_space<vmem>>, vector<1x32x4xf32>
    %28 = vector.shape_cast %27 : vector<1x32x4xf32> to vector<32x4xf32>
    %cst_31 = arith.constant dense<0.000000e+00> : vector<8x4xf32>
    %29 = tpu.matmul %26, %28, %cst_31 {dimension_numbers = #tpu.dot_dimension_numbers<[1], [0], [0], [1], [0, 0, 1, 1], [], []>} : vector<8x32xf32>, vector<32x4xf32>, vector<8x4xf32> -> vector<8x4xf32>
    %c0_32 = arith.constant 0 : index
    %c0_33 = arith.constant 0 : index
    %c0_34 = arith.constant 0 : index
    %30 = vector.load %arg8[%c0_32, %c0_33, %c0_34] : memref<4x1x4xf32, #tpu.memory_space<vmem>>, vector<1x1x4xf32>
    %31 = vector.shape_cast %30 : vector<1x1x4xf32> to vector<1x4xf32>
    %32 = vector.broadcast %31 : vector<1x4xf32> to vector<8x4xf32>
    %33 = arith.addf %29, %32 : vector<8x4xf32>
    %34 = arith.addf %1, %33 : vector<8x4xf32>
    %c1_35 = arith.constant 1 : index
    %c0_36 = arith.constant 0 : index
    %c0_37 = arith.constant 0 : index
    %35 = vector.load %arg3[%c1_35, %c0_36, %c0_37] : memref<4x4x32xf32, #tpu.memory_space<vmem>>, vector<1x4x32xf32>
    %36 = vector.shape_cast %35 : vector<1x4x32xf32> to vector<4x32xf32>
    %cst_38 = arith.constant dense<0.000000e+00> : vector<8x32xf32>
    %37 = tpu.matmul %34, %36, %cst_38 {dimension_numbers = #tpu.dot_dimension_numbers<[1], [0], [0], [1], [0, 0, 1, 1], [], []>} : vector<8x4xf32>, vector<4x32xf32>, vector<8x32xf32> -> vector<8x32xf32>
    %c1_39 = arith.constant 1 : index
    %c0_40 = arith.constant 0 : index
    %c0_41 = arith.constant 0 : index
    %38 = vector.load %arg4[%c1_39, %c0_40, %c0_41] : memref<4x1x32xf32, #tpu.memory_space<vmem>>, vector<1x1x32xf32>
    %39 = vector.shape_cast %38 : vector<1x1x32xf32> to vector<1x32xf32>
    %40 = vector.broadcast %39 : vector<1x32xf32> to vector<8x32xf32>
    %41 = arith.addf %37, %40 : vector<8x32xf32>
    %c1_42 = arith.constant 1 : index
    %c0_43 = arith.constant 0 : index
    %c0_44 = arith.constant 0 : index
    %c0_45 = arith.constant 0 : index
    %42 = vector.load %arg5[%c1_42, %c0_43, %c0_44, %c0_45] : memref<4x2x32x32xf32, #tpu.memory_space<vmem>>, vector<1x1x32x32xf32>
    %43 = vector.shape_cast %42 : vector<1x1x32x32xf32> to vector<32x32xf32>
    %cst_46 = arith.constant dense<0.000000e+00> : vector<8x32xf32>
    %44 = tpu.matmul %41, %43, %cst_46 {dimension_numbers = #tpu.dot_dimension_numbers<[1], [0], [0], [1], [0, 0, 1, 1], [], []>} : vector<8x32xf32>, vector<32x32xf32>, vector<8x32xf32> -> vector<8x32xf32>
    %c1_47 = arith.constant 1 : index
    %c0_48 = arith.constant 0 : index
    %c0_49 = arith.constant 0 : index
    %c0_50 = arith.constant 0 : index
    %45 = vector.load %arg6[%c1_47, %c0_48, %c0_49, %c0_50] : memref<4x2x1x32xf32, #tpu.memory_space<vmem>>, vector<1x1x1x32xf32>
    %46 = vector.shape_cast %45 : vector<1x1x1x32xf32> to vector<1x32xf32>
    %47 = vector.broadcast %46 : vector<1x32xf32> to vector<8x32xf32>
    %48 = arith.addf %44, %47 : vector<8x32xf32>
    %cst_51 = arith.constant 0.000000e+00 : f32
    %49 = vector.broadcast %cst_51 : f32 to vector<8x32xf32>
    %50 = arith.maximumf %48, %49 : vector<8x32xf32>
    %c1_52 = arith.constant 1 : index
    %c1_53 = arith.constant 1 : index
    %c0_54 = arith.constant 0 : index
    %c0_55 = arith.constant 0 : index
    %51 = vector.load %arg5[%c1_52, %c1_53, %c0_54, %c0_55] : memref<4x2x32x32xf32, #tpu.memory_space<vmem>>, vector<1x1x32x32xf32>
    %52 = vector.shape_cast %51 : vector<1x1x32x32xf32> to vector<32x32xf32>
    %cst_56 = arith.constant dense<0.000000e+00> : vector<8x32xf32>
    %53 = tpu.matmul %50, %52, %cst_56 {dimension_numbers = #tpu.dot_dimension_numbers<[1], [0], [0], [1], [0, 0, 1, 1], [], []>} : vector<8x32xf32>, vector<32x32xf32>, vector<8x32xf32> -> vector<8x32xf32>
    %c1_57 = arith.constant 1 : index
    %c1_58 = arith.constant 1 : index
    %c0_59 = arith.constant 0 : index
    %c0_60 = arith.constant 0 : index
    %54 = vector.load %arg6[%c1_57, %c1_58, %c0_59, %c0_60] : memref<4x2x1x32xf32, #tpu.memory_space<vmem>>, vector<1x1x1x32xf32>
    %55 = vector.shape_cast %54 : vector<1x1x1x32xf32> to vector<1x32xf32>
    %56 = vector.broadcast %55 : vector<1x32xf32> to vector<8x32xf32>
    %57 = arith.addf %53, %56 : vector<8x32xf32>
    %cst_61 = arith.constant 0.000000e+00 : f32
    %58 = vector.broadcast %cst_61 : f32 to vector<8x32xf32>
    %59 = arith.maximumf %57, %58 : vector<8x32xf32>
    %c1_62 = arith.constant 1 : index
    %c0_63 = arith.constant 0 : index
    %c0_64 = arith.constant 0 : index
    %60 = vector.load %arg7[%c1_62, %c0_63, %c0_64] : memref<4x32x4xf32, #tpu.memory_space<vmem>>, vector<1x32x4xf32>
    %61 = vector.shape_cast %60 : vector<1x32x4xf32> to vector<32x4xf32>
    %cst_65 = arith.constant dense<0.000000e+00> : vector<8x4xf32>
    %62 = tpu.matmul %59, %61, %cst_65 {dimension_numbers = #tpu.dot_dimension_numbers<[1], [0], [0], [1], [0, 0, 1, 1], [], []>} : vector<8x32xf32>, vector<32x4xf32>, vector<8x4xf32> -> vector<8x4xf32>
    %c1_66 = arith.constant 1 : index
    %c0_67 = arith.constant 0 : index
    %c0_68 = arith.constant 0 : index
    %63 = vector.load %arg8[%c1_66, %c0_67, %c0_68] : memref<4x1x4xf32, #tpu.memory_space<vmem>>, vector<1x1x4xf32>
    %64 = vector.shape_cast %63 : vector<1x1x4xf32> to vector<1x4xf32>
    %65 = vector.broadcast %64 : vector<1x4xf32> to vector<8x4xf32>
    %66 = arith.addf %62, %65 : vector<8x4xf32>
    %67 = arith.addf %0, %66 : vector<8x4xf32>
    %c2 = arith.constant 2 : index
    %c0_69 = arith.constant 0 : index
    %c0_70 = arith.constant 0 : index
    %68 = vector.load %arg3[%c2, %c0_69, %c0_70] : memref<4x4x32xf32, #tpu.memory_space<vmem>>, vector<1x4x32xf32>
    %69 = vector.shape_cast %68 : vector<1x4x32xf32> to vector<4x32xf32>
    %cst_71 = arith.constant dense<0.000000e+00> : vector<8x32xf32>
    %70 = tpu.matmul %67, %69, %cst_71 {dimension_numbers = #tpu.dot_dimension_numbers<[1], [0], [0], [1], [0, 0, 1, 1], [], []>} : vector<8x4xf32>, vector<4x32xf32>, vector<8x32xf32> -> vector<8x32xf32>
    %c2_72 = arith.constant 2 : index
    %c0_73 = arith.constant 0 : index
    %c0_74 = arith.constant 0 : index
    %71 = vector.load %arg4[%c2_72, %c0_73, %c0_74] : memref<4x1x32xf32, #tpu.memory_space<vmem>>, vector<1x1x32xf32>
    %72 = vector.shape_cast %71 : vector<1x1x32xf32> to vector<1x32xf32>
    %73 = vector.broadcast %72 : vector<1x32xf32> to vector<8x32xf32>
    %74 = arith.addf %70, %73 : vector<8x32xf32>
    %c2_75 = arith.constant 2 : index
    %c0_76 = arith.constant 0 : index
    %c0_77 = arith.constant 0 : index
    %c0_78 = arith.constant 0 : index
    %75 = vector.load %arg5[%c2_75, %c0_76, %c0_77, %c0_78] : memref<4x2x32x32xf32, #tpu.memory_space<vmem>>, vector<1x1x32x32xf32>
    %76 = vector.shape_cast %75 : vector<1x1x32x32xf32> to vector<32x32xf32>
    %cst_79 = arith.constant dense<0.000000e+00> : vector<8x32xf32>
    %77 = tpu.matmul %74, %76, %cst_79 {dimension_numbers = #tpu.dot_dimension_numbers<[1], [0], [0], [1], [0, 0, 1, 1], [], []>} : vector<8x32xf32>, vector<32x32xf32>, vector<8x32xf32> -> vector<8x32xf32>
    %c2_80 = arith.constant 2 : index
    %c0_81 = arith.constant 0 : index
    %c0_82 = arith.constant 0 : index
    %c0_83 = arith.constant 0 : index
    %78 = vector.load %arg6[%c2_80, %c0_81, %c0_82, %c0_83] : memref<4x2x1x32xf32, #tpu.memory_space<vmem>>, vector<1x1x1x32xf32>
    %79 = vector.shape_cast %78 : vector<1x1x1x32xf32> to vector<1x32xf32>
    %80 = vector.broadcast %79 : vector<1x32xf32> to vector<8x32xf32>
    %81 = arith.addf %77, %80 : vector<8x32xf32>
    %cst_84 = arith.constant 0.000000e+00 : f32
    %82 = vector.broadcast %cst_84 : f32 to vector<8x32xf32>
    %83 = arith.maximumf %81, %82 : vector<8x32xf32>
    %c2_85 = arith.constant 2 : index
    %c1_86 = arith.constant 1 : index
    %c0_87 = arith.constant 0 : index
    %c0_88 = arith.constant 0 : index
    %84 = vector.load %arg5[%c2_85, %c1_86, %c0_87, %c0_88] : memref<4x2x32x32xf32, #tpu.memory_space<vmem>>, vector<1x1x32x32xf32>
    %85 = vector.shape_cast %84 : vector<1x1x32x32xf32> to vector<32x32xf32>
    %cst_89 = arith.constant dense<0.000000e+00> : vector<8x32xf32>
    %86 = tpu.matmul %83, %85, %cst_89 {dimension_numbers = #tpu.dot_dimension_numbers<[1], [0], [0], [1], [0, 0, 1, 1], [], []>} : vector<8x32xf32>, vector<32x32xf32>, vector<8x32xf32> -> vector<8x32xf32>
    %c2_90 = arith.constant 2 : index
    %c1_91 = arith.constant 1 : index
    %c0_92 = arith.constant 0 : index
    %c0_93 = arith.constant 0 : index
    %87 = vector.load %arg6[%c2_90, %c1_91, %c0_92, %c0_93] : memref<4x2x1x32xf32, #tpu.memory_space<vmem>>, vector<1x1x1x32xf32>
    %88 = vector.shape_cast %87 : vector<1x1x1x32xf32> to vector<1x32xf32>
    %89 = vector.broadcast %88 : vector<1x32xf32> to vector<8x32xf32>
    %90 = arith.addf %86, %89 : vector<8x32xf32>
    %cst_94 = arith.constant 0.000000e+00 : f32
    %91 = vector.broadcast %cst_94 : f32 to vector<8x32xf32>
    %92 = arith.maximumf %90, %91 : vector<8x32xf32>
    %c2_95 = arith.constant 2 : index
    %c0_96 = arith.constant 0 : index
    %c0_97 = arith.constant 0 : index
    %93 = vector.load %arg7[%c2_95, %c0_96, %c0_97] : memref<4x32x4xf32, #tpu.memory_space<vmem>>, vector<1x32x4xf32>
    %94 = vector.shape_cast %93 : vector<1x32x4xf32> to vector<32x4xf32>
    %cst_98 = arith.constant dense<0.000000e+00> : vector<8x4xf32>
    %95 = tpu.matmul %92, %94, %cst_98 {dimension_numbers = #tpu.dot_dimension_numbers<[1], [0], [0], [1], [0, 0, 1, 1], [], []>} : vector<8x32xf32>, vector<32x4xf32>, vector<8x4xf32> -> vector<8x4xf32>
    %c2_99 = arith.constant 2 : index
    %c0_100 = arith.constant 0 : index
    %c0_101 = arith.constant 0 : index
    %96 = vector.load %arg8[%c2_99, %c0_100, %c0_101] : memref<4x1x4xf32, #tpu.memory_space<vmem>>, vector<1x1x4xf32>
    %97 = vector.shape_cast %96 : vector<1x1x4xf32> to vector<1x4xf32>
    %98 = vector.broadcast %97 : vector<1x4xf32> to vector<8x4xf32>
    %99 = arith.addf %95, %98 : vector<8x4xf32>
    %100 = arith.addf %34, %99 : vector<8x4xf32>
    %c3 = arith.constant 3 : index
    %c0_102 = arith.constant 0 : index
    %c0_103 = arith.constant 0 : index
    %101 = vector.load %arg3[%c3, %c0_102, %c0_103] : memref<4x4x32xf32, #tpu.memory_space<vmem>>, vector<1x4x32xf32>
    %102 = vector.shape_cast %101 : vector<1x4x32xf32> to vector<4x32xf32>
    %cst_104 = arith.constant dense<0.000000e+00> : vector<8x32xf32>
    %103 = tpu.matmul %100, %102, %cst_104 {dimension_numbers = #tpu.dot_dimension_numbers<[1], [0], [0], [1], [0, 0, 1, 1], [], []>} : vector<8x4xf32>, vector<4x32xf32>, vector<8x32xf32> -> vector<8x32xf32>
    %c3_105 = arith.constant 3 : index
    %c0_106 = arith.constant 0 : index
    %c0_107 = arith.constant 0 : index
    %104 = vector.load %arg4[%c3_105, %c0_106, %c0_107] : memref<4x1x32xf32, #tpu.memory_space<vmem>>, vector<1x1x32xf32>
    %105 = vector.shape_cast %104 : vector<1x1x32xf32> to vector<1x32xf32>
    %106 = vector.broadcast %105 : vector<1x32xf32> to vector<8x32xf32>
    %107 = arith.addf %103, %106 : vector<8x32xf32>
    %c3_108 = arith.constant 3 : index
    %c0_109 = arith.constant 0 : index
    %c0_110 = arith.constant 0 : index
    %c0_111 = arith.constant 0 : index
    %108 = vector.load %arg5[%c3_108, %c0_109, %c0_110, %c0_111] : memref<4x2x32x32xf32, #tpu.memory_space<vmem>>, vector<1x1x32x32xf32>
    %109 = vector.shape_cast %108 : vector<1x1x32x32xf32> to vector<32x32xf32>
    %cst_112 = arith.constant dense<0.000000e+00> : vector<8x32xf32>
    %110 = tpu.matmul %107, %109, %cst_112 {dimension_numbers = #tpu.dot_dimension_numbers<[1], [0], [0], [1], [0, 0, 1, 1], [], []>} : vector<8x32xf32>, vector<32x32xf32>, vector<8x32xf32> -> vector<8x32xf32>
    %c3_113 = arith.constant 3 : index
    %c0_114 = arith.constant 0 : index
    %c0_115 = arith.constant 0 : index
    %c0_116 = arith.constant 0 : index
    %111 = vector.load %arg6[%c3_113, %c0_114, %c0_115, %c0_116] : memref<4x2x1x32xf32, #tpu.memory_space<vmem>>, vector<1x1x1x32xf32>
    %112 = vector.shape_cast %111 : vector<1x1x1x32xf32> to vector<1x32xf32>
    %113 = vector.broadcast %112 : vector<1x32xf32> to vector<8x32xf32>
    %114 = arith.addf %110, %113 : vector<8x32xf32>
    %cst_117 = arith.constant 0.000000e+00 : f32
    %115 = vector.broadcast %cst_117 : f32 to vector<8x32xf32>
    %116 = arith.maximumf %114, %115 : vector<8x32xf32>
    %c3_118 = arith.constant 3 : index
    %c1_119 = arith.constant 1 : index
    %c0_120 = arith.constant 0 : index
    %c0_121 = arith.constant 0 : index
    %117 = vector.load %arg5[%c3_118, %c1_119, %c0_120, %c0_121] : memref<4x2x32x32xf32, #tpu.memory_space<vmem>>, vector<1x1x32x32xf32>
    %118 = vector.shape_cast %117 : vector<1x1x32x32xf32> to vector<32x32xf32>
    %cst_122 = arith.constant dense<0.000000e+00> : vector<8x32xf32>
    %119 = tpu.matmul %116, %118, %cst_122 {dimension_numbers = #tpu.dot_dimension_numbers<[1], [0], [0], [1], [0, 0, 1, 1], [], []>} : vector<8x32xf32>, vector<32x32xf32>, vector<8x32xf32> -> vector<8x32xf32>
    %c3_123 = arith.constant 3 : index
    %c1_124 = arith.constant 1 : index
    %c0_125 = arith.constant 0 : index
    %c0_126 = arith.constant 0 : index
    %120 = vector.load %arg6[%c3_123, %c1_124, %c0_125, %c0_126] : memref<4x2x1x32xf32, #tpu.memory_space<vmem>>, vector<1x1x1x32xf32>
    %121 = vector.shape_cast %120 : vector<1x1x1x32xf32> to vector<1x32xf32>
    %122 = vector.broadcast %121 : vector<1x32xf32> to vector<8x32xf32>
    %123 = arith.addf %119, %122 : vector<8x32xf32>
    %cst_127 = arith.constant 0.000000e+00 : f32
    %124 = vector.broadcast %cst_127 : f32 to vector<8x32xf32>
    %125 = arith.maximumf %123, %124 : vector<8x32xf32>
    %c3_128 = arith.constant 3 : index
    %c0_129 = arith.constant 0 : index
    %c0_130 = arith.constant 0 : index
    %126 = vector.load %arg7[%c3_128, %c0_129, %c0_130] : memref<4x32x4xf32, #tpu.memory_space<vmem>>, vector<1x32x4xf32>
    %127 = vector.shape_cast %126 : vector<1x32x4xf32> to vector<32x4xf32>
    %cst_131 = arith.constant dense<0.000000e+00> : vector<8x4xf32>
    %128 = tpu.matmul %125, %127, %cst_131 {dimension_numbers = #tpu.dot_dimension_numbers<[1], [0], [0], [1], [0, 0, 1, 1], [], []>} : vector<8x32xf32>, vector<32x4xf32>, vector<8x4xf32> -> vector<8x4xf32>
    %c3_132 = arith.constant 3 : index
    %c0_133 = arith.constant 0 : index
    %c0_134 = arith.constant 0 : index
    %129 = vector.load %arg8[%c3_132, %c0_133, %c0_134] : memref<4x1x4xf32, #tpu.memory_space<vmem>>, vector<1x1x4xf32>
    %130 = vector.shape_cast %129 : vector<1x1x4xf32> to vector<1x4xf32>
    %131 = vector.broadcast %130 : vector<1x4xf32> to vector<8x4xf32>
    %132 = arith.addf %128, %131 : vector<8x4xf32>
    %133 = arith.addf %67, %132 : vector<8x4xf32>
    %c0_135 = arith.constant 0 : index
    %c0_136 = arith.constant 0 : index
    %134 = vector.load %arg9[%c0_135, %c0_136] : memref<1x4xf32, #tpu.memory_space<vmem>>, vector<1x4xf32>
    %135 = vector.broadcast %134 : vector<1x4xf32> to vector<8x4xf32>
    %136 = arith.mulf %133, %135 : vector<8x4xf32>
    %c0_137 = arith.constant 0 : index
    %c0_138 = arith.constant 0 : index
    %137 = vector.load %arg11[%c0_137, %c0_138] : memref<8x8xf32, #tpu.memory_space<vmem>>, vector<8x4xf32>
    tpu.vector_store %arg11[%c0_137, %c0_138], %136 {strides = array<i32>} : memref<8x8xf32, #tpu.memory_space<vmem>>, vector<8x4xf32>,
    %c0_139 = arith.constant 0 : index
    %c0_140 = arith.constant 0 : index
    %138 = vector.load %arg10[%c0_139, %c0_140] : memref<1x4xf32, #tpu.memory_space<vmem>>, vector<1x4xf32>
    %139 = vector.broadcast %138 : vector<1x4xf32> to vector<8x4xf32>
    %140 = arith.mulf %100, %139 : vector<8x4xf32>
    %c0_141 = arith.constant 0 : index
    %c4 = arith.constant 4 : index
    %141 = vector.load %arg11[%c0_141, %c4] : memref<8x8xf32, #tpu.memory_space<vmem>>, vector<8x4xf32>
    tpu.vector_store %arg11[%c0_141, %c4], %140 {strides = array<i32>} : memref<8x8xf32, #tpu.memory_space<vmem>>, vector<8x4xf32>,
    return
  }
  func.func @transform_0(%arg0: i32) -> (i32, i32) {
    %c0_i32 = arith.constant 0 : i32
    %c0_i32_0 = arith.constant 0 : i32
    return %arg0, %c0_i32 : i32, i32
  }
  func.func @transform_1(%arg0: i32) -> (i32, i32) {
    %c0_i32 = arith.constant 0 : i32
    %c0_i32_0 = arith.constant 0 : i32
    return %arg0, %c0_i32 : i32, i32
  }
  func.func @transform_2(%arg0: i32) -> (i32, i32, i32) {
    %c0_i32 = arith.constant 0 : i32
    %c0_i32_0 = arith.constant 0 : i32
    %c0_i32_1 = arith.constant 0 : i32
    %c0_i32_2 = arith.constant 0 : i32
    return %c0_i32, %c0_i32_0, %c0_i32_1 : i32, i32, i32
  }
  func.func @transform_3(%arg0: i32) -> (i32, i32, i32) {
    %c0_i32 = arith.constant 0 : i32
    %c0_i32_0 = arith.constant 0 : i32
    %c0_i32_1 = arith.constant 0 : i32
    %c0_i32_2 = arith.constant 0 : i32
    return %c0_i32, %c0_i32_0, %c0_i32_1 : i32, i32, i32
  }
  func.func @transform_4(%arg0: i32) -> (i32, i32, i32, i32) {
    %c0_i32 = arith.constant 0 : i32
    %c0_i32_0 = arith.constant 0 : i32
    %c0_i32_1 = arith.constant 0 : i32
    %c0_i32_2 = arith.constant 0 : i32
    %c0_i32_3 = arith.constant 0 : i32
    return %c0_i32, %c0_i32_0, %c0_i32_1, %c0_i32_2 : i32, i32, i32, i32
  }
  func.func @transform_5(%arg0: i32) -> (i32, i32, i32, i32) {
    %c0_i32 = arith.constant 0 : i32
    %c0_i32_0 = arith.constant 0 : i32
    %c0_i32_1 = arith.constant 0 : i32
    %c0_i32_2 = arith.constant 0 : i32
    %c0_i32_3 = arith.constant 0 : i32
    return %c0_i32, %c0_i32_0, %c0_i32_1, %c0_i32_2 : i32, i32, i32, i32
  }
  func.func @transform_6(%arg0: i32) -> (i32, i32, i32) {
    %c0_i32 = arith.constant 0 : i32
    %c0_i32_0 = arith.constant 0 : i32
    %c0_i32_1 = arith.constant 0 : i32
    %c0_i32_2 = arith.constant 0 : i32
    return %c0_i32, %c0_i32_0, %c0_i32_1 : i32, i32, i32
  }
  func.func @transform_7(%arg0: i32) -> (i32, i32, i32) {
    %c0_i32 = arith.constant 0 : i32
    %c0_i32_0 = arith.constant 0 : i32
    %c0_i32_1 = arith.constant 0 : i32
    %c0_i32_2 = arith.constant 0 : i32
    return %c0_i32, %c0_i32_0, %c0_i32_1 : i32, i32, i32
  }
  func.func @transform_8(%arg0: i32) -> (i32, i32) {
    %c0_i32 = arith.constant 0 : i32
    %c0_i32_0 = arith.constant 0 : i32
    %c0_i32_1 = arith.constant 0 : i32
    return %c0_i32, %c0_i32_0 : i32, i32
  }
  func.func @transform_9(%arg0: i32) -> (i32, i32) {
    %c0_i32 = arith.constant 0 : i32
    %c0_i32_0 = arith.constant 0 : i32
    %c0_i32_1 = arith.constant 0 : i32
    return %c0_i32, %c0_i32_0 : i32, i32
  }
  func.func @transform_10(%arg0: i32) -> (i32, i32) {
    %c0_i32 = arith.constant 0 : i32
    %c0_i32_0 = arith.constant 0 : i32
    return %arg0, %c0_i32 : i32, i32
  }
}

module attributes {stable_mosaic.version = 11 : i64} {
  func.func @nice_kernel(%arg0: i32, %arg1: memref<8x4xf32, #tpu.memory_space<vmem>>, %arg2: memref<8x4xf32, #tpu.memory_space<vmem>>, %arg3: memref<4x4x32xf32, #tpu.memory_space<vmem>>, %arg4: memref<4x1x32xf32, #tpu.memory_space<vmem>>, %arg5: memref<4x2x32x32xf32, #tpu.memory_space<vmem>>, %arg6: memref<4x2x1x32xf32, #tpu.memory_space<vmem>>, %arg7: memref<4x32x4xf32, #tpu.memory_space<vmem>>, %arg8: memref<4x1x4xf32, #tpu.memory_space<vmem>>, %arg9: memref<1x4xf32, #tpu.memory_space<vmem>>, %arg10: memref<1x4xf32, #tpu.memory_space<vmem>>, %arg11: memref<8x8xf32, #tpu.memory_space<vmem>>) attributes {dimension_semantics = [#tpu.dimension_semantics<parallel>], iteration_bounds = array<i64: 2>, scalar_prefetch = 0 : i64, scratch_operands = 0 : i64, tpu.core_type = #tpu.core_type<tc>, window_params = [{transform_indices = @transform_0, window_bounds = array<i64: 8, 4>}, {transform_indices = @transform_1, window_bounds = array<i64: 8, 4>}, {pipeline_mode = #tpu.pipeline_mode<synchronous>, transform_indices = @transform_2, window_bounds = array<i64: 4, 4, 32>}, {pipeline_mode = #tpu.pipeline_mode<synchronous>, transform_indices = @transform_3, window_bounds = array<i64: 4, 1, 32>}, {pipeline_mode = #tpu.pipeline_mode<synchronous>, transform_indices = @transform_4, window_bounds = array<i64: 4, 2, 32, 32>}, {pipeline_mode = #tpu.pipeline_mode<synchronous>, transform_indices = @transform_5, window_bounds = array<i64: 4, 2, 1, 32>}, {pipeline_mode = #tpu.pipeline_mode<synchronous>, transform_indices = @transform_6, window_bounds = array<i64: 4, 32, 4>}, {pipeline_mode = #tpu.pipeline_mode<synchronous>, transform_indices = @transform_7, window_bounds = array<i64: 4, 1, 4>}, {pipeline_mode = #tpu.pipeline_mode<synchronous>, transform_indices = @transform_8, window_bounds = array<i64: 1, 4>}, {pipeline_mode = #tpu.pipeline_mode<synchronous>, transform_indices = @transform_9, window_bounds = array<i64: 1, 4>}, {transform_indices = @transform_10, window_bounds = array<i64: 8, 8>}]} {
    %c0 = arith.constant 0 : index
    %c0_0 = arith.constant 0 : index
    %0 = vector.load %arg1[%c0, %c0_0] : memref<8x4xf32, #tpu.memory_space<vmem>>, vector<8x4xf32>
    %c0_1 = arith.constant 0 : index
    %c0_2 = arith.constant 0 : index
    %1 = vector.load %arg2[%c0_1, %c0_2] : memref<8x4xf32, #tpu.memory_space<vmem>>, vector<8x4xf32>
    %c0_3 = arith.constant 0 : index
    %c0_4 = arith.constant 0 : index
    %c0_5 = arith.constant 0 : index
    %2 = vector.load %arg3[%c0_3, %c0_4, %c0_5] : memref<4x4x32xf32, #tpu.memory_space<vmem>>, vector<1x4x32xf32>
    %3 = vector.shape_cast %2 : vector<1x4x32xf32> to vector<4x32xf32>
    %cst = arith.constant dense<0.000000e+00> : vector<8x32xf32>
    %4 = tpu.matmul %0, %3, %cst {dimension_numbers = #tpu.dot_dimension_numbers<[1], [0], [0], [1], [0, 0, 1, 1], [], []>} : vector<8x4xf32>, vector<4x32xf32>, vector<8x32xf32> -> vector<8x32xf32>
    %c0_6 = arith.constant 0 : index
    %c0_7 = arith.constant 0 : index
    %c0_8 = arith.constant 0 : index
    %5 = vector.load %arg4[%c0_6, %c0_7, %c0_8] : memref<4x1x32xf32, #tpu.memory_space<vmem>>, vector<1x1x32xf32>
    %6 = vector.shape_cast %5 : vector<1x1x32xf32> to vector<1x32xf32>
    %7 = vector.broadcast %6 : vector<1x32xf32> to vector<8x32xf32>
    %8 = arith.addf %4, %7 : vector<8x32xf32>
    %c0_9 = arith.constant 0 : index
    %c0_10 = arith.constant 0 : index
    %c0_11 = arith.constant 0 : index
    %c0_12 = arith.constant 0 : index
    %9 = vector.load %arg5[%c0_9, %c0_10, %c0_11, %c0_12] : memref<4x2x32x32xf32, #tpu.memory_space<vmem>>, vector<1x1x32x32xf32>
    %10 = vector.shape_cast %9 : vector<1x1x32x32xf32> to vector<32x32xf32>
    %cst_13 = arith.constant dense<0.000000e+00> : vector<8x32xf32>
    %11 = tpu.matmul %8, %10, %cst_13 {dimension_numbers = #tpu.dot_dimension_numbers<[1], [0], [0], [1], [0, 0, 1, 1], [], []>} : vector<8x32xf32>, vector<32x32xf32>, vector<8x32xf32> -> vector<8x32xf32>
    %c0_14 = arith.constant 0 : index
    %c0_15 = arith.constant 0 : index
    %c0_16 = arith.constant 0 : index
    %c0_17 = arith.constant 0 : index
    %12 = vector.load %arg6[%c0_14, %c0_15, %c0_16, %c0_17] : memref<4x2x1x32xf32, #tpu.memory_space<vmem>>, vector<1x1x1x32xf32>
    %13 = vector.shape_cast %12 : vector<1x1x1x32xf32> to vector<1x32xf32>
    %14 = vector.broadcast %13 : vector<1x32xf32> to vector<8x32xf32>
    %15 = arith.addf %11, %14 : vector<8x32xf32>
    %cst_18 = arith.constant 0.000000e+00 : f32
    %16 = vector.broadcast %cst_18 : f32 to vector<8x32xf32>
    %17 = arith.maximumf %15, %16 : vector<8x32xf32>
    %c0_19 = arith.constant 0 : index
    %c1 = arith.constant 1 : index
    %c0_20 = arith.constant 0 : index
    %c0_21 = arith.constant 0 : index
    %18 = vector.load %arg5[%c0_19, %c1, %c0_20, %c0_21] : memref<4x2x32x32xf32, #tpu.memory_space<vmem>>, vector<1x1x32x32xf32>
    %19 = vector.shape_cast %18 : vector<1x1x32x32xf32> to vector<32x32xf32>
    %cst_22 = arith.constant dense<0.000000e+00> : vector<8x32xf32>
    %20 = tpu.matmul %17, %19, %cst_22 {dimension_numbers = #tpu.dot_dimension_numbers<[1], [0], [0], [1], [0, 0, 1, 1], [], []>} : vector<8x32xf32>, vector<32x32xf32>, vector<8x32xf32> -> vector<8x32xf32>
    %c0_23 = arith.constant 0 : index
    %c1_24 = arith.constant 1 : index
    %c0_25 = arith.constant 0 : index
    %c0_26 = arith.constant 0 : index
    %21 = vector.load %arg6[%c0_23, %c1_24, %c0_25, %c0_26] : memref<4x2x1x32xf32, #tpu.memory_space<vmem>>, vector<1x1x1x32xf32>
    %22 = vector.shape_cast %21 : vector<1x1x1x32xf32> to vector<1x32xf32>
    %23 = vector.broadcast %22 : vector<1x32xf32> to vector<8x32xf32>
    %24 = arith.addf %20, %23 : vector<8x32xf32>
    %cst_27 = arith.constant 0.000000e+00 : f32
    %25 = vector.broadcast %cst_27 : f32 to vector<8x32xf32>
    %26 = arith.maximumf %24, %25 : vector<8x32xf32>
    %c0_28 = arith.constant 0 : index
    %c0_29 = arith.constant 0 : index
    %c0_30 = arith.constant 0 : index
    %27 = vector.load %arg7[%c0_28, %c0_29, %c0_30] : memref<4x32x4xf32, #tpu.memory_space<vmem>>, vector<1x32x4xf32>
    %28 = vector.shape_cast %27 : vector<1x32x4xf32> to vector<32x4xf32>
    %cst_31 = arith.constant dense<0.000000e+00> : vector<8x4xf32>
    %29 = tpu.matmul %26, %28, %cst_31 {dimension_numbers = #tpu.dot_dimension_numbers<[1], [0], [0], [1], [0, 0, 1, 1], [], []>} : vector<8x32xf32>, vector<32x4xf32>, vector<8x4xf32> -> vector<8x4xf32>
    %c0_32 = arith.constant 0 : index
    %c0_33 = arith.constant 0 : index
    %c0_34 = arith.constant 0 : index
    %30 = vector.load %arg8[%c0_32, %c0_33, %c0_34] : memref<4x1x4xf32, #tpu.memory_space<vmem>>, vector<1x1x4xf32>
    %31 = vector.shape_cast %30 : vector<1x1x4xf32> to vector<1x4xf32>
    %32 = vector.broadcast %31 : vector<1x4xf32> to vector<8x4xf32>
    %33 = arith.addf %29, %32 : vector<8x4xf32>
    %34 = arith.addf %1, %33 : vector<8x4xf32>
    %c1_35 = arith.constant 1 : index
    %c0_36 = arith.constant 0 : index
    %c0_37 = arith.constant 0 : index
    %35 = vector.load %arg3[%c1_35, %c0_36, %c0_37] : memref<4x4x32xf32, #tpu.memory_space<vmem>>, vector<1x4x32xf32>
    %36 = vector.shape_cast %35 : vector<1x4x32xf32> to vector<4x32xf32>
    %cst_38 = arith.constant dense<0.000000e+00> : vector<8x32xf32>
    %37 = tpu.matmul %34, %36, %cst_38 {dimension_numbers = #tpu.dot_dimension_numbers<[1], [0], [0], [1], [0, 0, 1, 1], [], []>} : vector<8x4xf32>, vector<4x32xf32>, vector<8x32xf32> -> vector<8x32xf32>
    %c1_39 = arith.constant 1 : index
    %c0_40 = arith.constant 0 : index
    %c0_41 = arith.constant 0 : index
    %38 = vector.load %arg4[%c1_39, %c0_40, %c0_41] : memref<4x1x32xf32, #tpu.memory_space<vmem>>, vector<1x1x32xf32>
    %39 = vector.shape_cast %38 : vector<1x1x32xf32> to vector<1x32xf32>
    %40 = vector.broadcast %39 : vector<1x32xf32> to vector<8x32xf32>
    %41 = arith.addf %37, %40 : vector<8x32xf32>
    %c1_42 = arith.constant 1 : index
    %c0_43 = arith.constant 0 : index
    %c0_44 = arith.constant 0 : index
    %c0_45 = arith.constant 0 : index
    %42 = vector.load %arg5[%c1_42, %c0_43, %c0_44, %c0_45] : memref<4x2x32x32xf32, #tpu.memory_space<vmem>>, vector<1x1x32x32xf32>
    %43 = vector.shape_cast %42 : vector<1x1x32x32xf32> to vector<32x32xf32>
    %cst_46 = arith.constant dense<0.000000e+00> : vector<8x32xf32>
    %44 = tpu.matmul %41, %43, %cst_46 {dimension_numbers = #tpu.dot_dimension_numbers<[1], [0], [0], [1], [0, 0, 1, 1], [], []>} : vector<8x32xf32>, vector<32x32xf32>, vector<8x32xf32> -> vector<8x32xf32>
    %c1_47 = arith.constant 1 : index
    %c0_48 = arith.constant 0 : index
    %c0_49 = arith.constant 0 : index
    %c0_50 = arith.constant 0 : index
    %45 = vector.load %arg6[%c1_47, %c0_48, %c0_49, %c0_50] : memref<4x2x1x32xf32, #tpu.memory_space<vmem>>, vector<1x1x1x32xf32>
    %46 = vector.shape_cast %45 : vector<1x1x1x32xf32> to vector<1x32xf32>
    %47 = vector.broadcast %46 : vector<1x32xf32> to vector<8x32xf32>
    %48 = arith.addf %44, %47 : vector<8x32xf32>
    %cst_51 = arith.constant 0.000000e+00 : f32
    %49 = vector.broadcast %cst_51 : f32 to vector<8x32xf32>
    %50 = arith.maximumf %48, %49 : vector<8x32xf32>
    %c1_52 = arith.constant 1 : index
    %c1_53 = arith.constant 1 : index
    %c0_54 = arith.constant 0 : index
    %c0_55 = arith.constant 0 : index
    %51 = vector.load %arg5[%c1_52, %c1_53, %c0_54, %c0_55] : memref<4x2x32x32xf32, #tpu.memory_space<vmem>>, vector<1x1x32x32xf32>
    %52 = vector.shape_cast %51 : vector<1x1x32x32xf32> to vector<32x32xf32>
    %cst_56 = arith.constant dense<0.000000e+00> : vector<8x32xf32>
    %53 = tpu.matmul %50, %52, %cst_56 {dimension_numbers = #tpu.dot_dimension_numbers<[1], [0], [0], [1], [0, 0, 1, 1], [], []>} : vector<8x32xf32>, vector<32x32xf32>, vector<8x32xf32> -> vector<8x32xf32>
    %c1_57 = arith.constant 1 : index
    %c1_58 = arith.constant 1 : index
    %c0_59 = arith.constant 0 : index
    %c0_60 = arith.constant 0 : index
    %54 = vector.load %arg6[%c1_57, %c1_58, %c0_59, %c0_60] : memref<4x2x1x32xf32, #tpu.memory_space<vmem>>, vector<1x1x1x32xf32>
    %55 = vector.shape_cast %54 : vector<1x1x1x32xf32> to vector<1x32xf32>
    %56 = vector.broadcast %55 : vector<1x32xf32> to vector<8x32xf32>
    %57 = arith.addf %53, %56 : vector<8x32xf32>
    %cst_61 = arith.constant 0.000000e+00 : f32
    %58 = vector.broadcast %cst_61 : f32 to vector<8x32xf32>
    %59 = arith.maximumf %57, %58 : vector<8x32xf32>
    %c1_62 = arith.constant 1 : index
    %c0_63 = arith.constant 0 : index
    %c0_64 = arith.constant 0 : index
    %60 = vector.load %arg7[%c1_62, %c0_63, %c0_64] : memref<4x32x4xf32, #tpu.memory_space<vmem>>, vector<1x32x4xf32>
    %61 = vector.shape_cast %60 : vector<1x32x4xf32> to vector<32x4xf32>
    %cst_65 = arith.constant dense<0.000000e+00> : vector<8x4xf32>
    %62 = tpu.matmul %59, %61, %cst_65 {dimension_numbers = #tpu.dot_dimension_numbers<[1], [0], [0], [1], [0, 0, 1, 1], [], []>} : vector<8x32xf32>, vector<32x4xf32>, vector<8x4xf32> -> vector<8x4xf32>
    %c1_66 = arith.constant 1 : index
    %c0_67 = arith.constant 0 : index
    %c0_68 = arith.constant 0 : index
    %63 = vector.load %arg8[%c1_66, %c0_67, %c0_68] : memref<4x1x4xf32, #tpu.memory_space<vmem>>, vector<1x1x4xf32>
    %64 = vector.shape_cast %63 : vector<1x1x4xf32> to vector<1x4xf32>
    %65 = vector.broadcast %64 : vector<1x4xf32> to vector<8x4xf32>
    %66 = arith.addf %62, %65 : vector<8x4xf32>
    %67 = arith.addf %0, %66 : vector<8x4xf32>
    %c2 = arith.constant 2 : index
    %c0_69 = arith.constant 0 : index
    %c0_70 = arith.constant 0 : index
    %68 = vector.load %arg3[%c2, %c0_69, %c0_70] : memref<4x4x32xf32, #tpu.memory_space<vmem>>, vector<1x4x32xf32>
    %69 = vector.shape_cast %68 : vector<1x4x32xf32> to vector<4x32xf32>
    %cst_71 = arith.constant dense<0.000000e+00> : vector<8x32xf32>
    %70 = tpu.matmul %67, %69, %cst_71 {dimension_numbers = #tpu.dot_dimension_numbers<[1], [0], [0], [1], [0, 0, 1, 1], [], []>} : vector<8x4xf32>, vector<4x32xf32>, vector<8x32xf32> -> vector<8x32xf32>
    %c2_72 = arith.constant 2 : index
    %c0_73 = arith.constant 0 : index
    %c0_74 = arith.constant 0 : index
    %71 = vector.load %arg4[%c2_72, %c0_73, %c0_74] : memref<4x1x32xf32, #tpu.memory_space<vmem>>, vector<1x1x32xf32>
    %72 = vector.shape_cast %71 : vector<1x1x32xf32> to vector<1x32xf32>
    %73 = vector.broadcast %72 : vector<1x32xf32> to vector<8x32xf32>
    %74 = arith.addf %70, %73 : vector<8x32xf32>
    %c2_75 = arith.constant 2 : index
    %c0_76 = arith.constant 0 : index
    %c0_77 = arith.constant 0 : index
    %c0_78 = arith.constant 0 : index
    %75 = vector.load %arg5[%c2_75, %c0_76, %c0_77, %c0_78] : memref<4x2x32x32xf32, #tpu.memory_space<vmem>>, vector<1x1x32x32xf32>
    %76 = vector.shape_cast %75 : vector<1x1x32x32xf32> to vector<32x32xf32>
    %cst_79 = arith.constant dense<0.000000e+00> : vector<8x32xf32>
    %77 = tpu.matmul %74, %76, %cst_79 {dimension_numbers = #tpu.dot_dimension_numbers<[1], [0], [0], [1], [0, 0, 1, 1], [], []>} : vector<8x32xf32>, vector<32x32xf32>, vector<8x32xf32> -> vector<8x32xf32>
    %c2_80 = arith.constant 2 : index
    %c0_81 = arith.constant 0 : index
    %c0_82 = arith.constant 0 : index
    %c0_83 = arith.constant 0 : index
    %78 = vector.load %arg6[%c2_80, %c0_81, %c0_82, %c0_83] : memref<4x2x1x32xf32, #tpu.memory_space<vmem>>, vector<1x1x1x32xf32>
    %79 = vector.shape_cast %78 : vector<1x1x1x32xf32> to vector<1x32xf32>
    %80 = vector.broadcast %79 : vector<1x32xf32> to vector<8x32xf32>
    %81 = arith.addf %77, %80 : vector<8x32xf32>
    %cst_84 = arith.constant 0.000000e+00 : f32
    %82 = vector.broadcast %cst_84 : f32 to vector<8x32xf32>
    %83 = arith.maximumf %81, %82 : vector<8x32xf32>
    %c2_85 = arith.constant 2 : index
    %c1_86 = arith.constant 1 : index
    %c0_87 = arith.constant 0 : index
    %c0_88 = arith.constant 0 : index
    %84 = vector.load %arg5[%c2_85, %c1_86, %c0_87, %c0_88] : memref<4x2x32x32xf32, #tpu.memory_space<vmem>>, vector<1x1x32x32xf32>
    %85 = vector.shape_cast %84 : vector<1x1x32x32xf32> to vector<32x32xf32>
    %cst_89 = arith.constant dense<0.000000e+00> : vector<8x32xf32>
    %86 = tpu.matmul %83, %85, %cst_89 {dimension_numbers = #tpu.dot_dimension_numbers<[1], [0], [0], [1], [0, 0, 1, 1], [], []>} : vector<8x32xf32>, vector<32x32xf32>, vector<8x32xf32> -> vector<8x32xf32>
    %c2_90 = arith.constant 2 : index
    %c1_91 = arith.constant 1 : index
    %c0_92 = arith.constant 0 : index
    %c0_93 = arith.constant 0 : index
    %87 = vector.load %arg6[%c2_90, %c1_91, %c0_92, %c0_93] : memref<4x2x1x32xf32, #tpu.memory_space<vmem>>, vector<1x1x1x32xf32>
    %88 = vector.shape_cast %87 : vector<1x1x1x32xf32> to vector<1x32xf32>
    %89 = vector.broadcast %88 : vector<1x32xf32> to vector<8x32xf32>
    %90 = arith.addf %86, %89 : vector<8x32xf32>
    %cst_94 = arith.constant 0.000000e+00 : f32
    %91 = vector.broadcast %cst_94 : f32 to vector<8x32xf32>
    %92 = arith.maximumf %90, %91 : vector<8x32xf32>
    %c2_95 = arith.constant 2 : index
    %c0_96 = arith.constant 0 : index
    %c0_97 = arith.constant 0 : index
    %93 = vector.load %arg7[%c2_95, %c0_96, %c0_97] : memref<4x32x4xf32, #tpu.memory_space<vmem>>, vector<1x32x4xf32>
    %94 = vector.shape_cast %93 : vector<1x32x4xf32> to vector<32x4xf32>
    %cst_98 = arith.constant dense<0.000000e+00> : vector<8x4xf32>
    %95 = tpu.matmul %92, %94, %cst_98 {dimension_numbers = #tpu.dot_dimension_numbers<[1], [0], [0], [1], [0, 0, 1, 1], [], []>} : vector<8x32xf32>, vector<32x4xf32>, vector<8x4xf32> -> vector<8x4xf32>
    %c2_99 = arith.constant 2 : index
    %c0_100 = arith.constant 0 : index
    %c0_101 = arith.constant 0 : index
    %96 = vector.load %arg8[%c2_99, %c0_100, %c0_101] : memref<4x1x4xf32, #tpu.memory_space<vmem>>, vector<1x1x4xf32>
    %97 = vector.shape_cast %96 : vector<1x1x4xf32> to vector<1x4xf32>
    %98 = vector.broadcast %97 : vector<1x4xf32> to vector<8x4xf32>
    %99 = arith.addf %95, %98 : vector<8x4xf32>
    %100 = arith.addf %34, %99 : vector<8x4xf32>
    %c3 = arith.constant 3 : index
    %c0_102 = arith.constant 0 : index
    %c0_103 = arith.constant 0 : index
    %101 = vector.load %arg3[%c3, %c0_102, %c0_103] : memref<4x4x32xf32, #tpu.memory_space<vmem>>, vector<1x4x32xf32>
    %102 = vector.shape_cast %101 : vector<1x4x32xf32> to vector<4x32xf32>
    %cst_104 = arith.constant dense<0.000000e+00> : vector<8x32xf32>
    %103 = tpu.matmul %100, %102, %cst_104 {dimension_numbers = #tpu.dot_dimension_numbers<[1], [0], [0], [1], [0, 0, 1, 1], [], []>} : vector<8x4xf32>, vector<4x32xf32>, vector<8x32xf32> -> vector<8x32xf32>
    %c3_105 = arith.constant 3 : index
    %c0_106 = arith.constant 0 : index
    %c0_107 = arith.constant 0 : index
    %104 = vector.load %arg4[%c3_105, %c0_106, %c0_107] : memref<4x1x32xf32, #tpu.memory_space<vmem>>, vector<1x1x32xf32>
    %105 = vector.shape_cast %104 : vector<1x1x32xf32> to vector<1x32xf32>
    %106 = vector.broadcast %105 : vector<1x32xf32> to vector<8x32xf32>
    %107 = arith.addf %103, %106 : vector<8x32xf32>
    %c3_108 = arith.constant 3 : index
    %c0_109 = arith.constant 0 : index
    %c0_110 = arith.constant 0 : index
    %c0_111 = arith.constant 0 : index
    %108 = vector.load %arg5[%c3_108, %c0_109, %c0_110, %c0_111] : memref<4x2x32x32xf32, #tpu.memory_space<vmem>>, vector<1x1x32x32xf32>
    %109 = vector.shape_cast %108 : vector<1x1x32x32xf32> to vector<32x32xf32>
    %cst_112 = arith.constant dense<0.000000e+00> : vector<8x32xf32>
    %110 = tpu.matmul %107, %109, %cst_112 {dimension_numbers = #tpu.dot_dimension_numbers<[1], [0], [0], [1], [0, 0, 1, 1], [], []>} : vector<8x32xf32>, vector<32x32xf32>, vector<8x32xf32> -> vector<8x32xf32>
    %c3_113 = arith.constant 3 : index
    %c0_114 = arith.constant 0 : index
    %c0_115 = arith.constant 0 : index
    %c0_116 = arith.constant 0 : index
    %111 = vector.load %arg6[%c3_113, %c0_114, %c0_115, %c0_116] : memref<4x2x1x32xf32, #tpu.memory_space<vmem>>, vector<1x1x1x32xf32>
    %112 = vector.shape_cast %111 : vector<1x1x1x32xf32> to vector<1x32xf32>
    %113 = vector.broadcast %112 : vector<1x32xf32> to vector<8x32xf32>
    %114 = arith.addf %110, %113 : vector<8x32xf32>
    %cst_117 = arith.constant 0.000000e+00 : f32
    %115 = vector.broadcast %cst_117 : f32 to vector<8x32xf32>
    %116 = arith.maximumf %114, %115 : vector<8x32xf32>
    %c3_118 = arith.constant 3 : index
    %c1_119 = arith.constant 1 : index
    %c0_120 = arith.constant 0 : index
    %c0_121 = arith.constant 0 : index
    %117 = vector.load %arg5[%c3_118, %c1_119, %c0_120, %c0_121] : memref<4x2x32x32xf32, #tpu.memory_space<vmem>>, vector<1x1x32x32xf32>
    %118 = vector.shape_cast %117 : vector<1x1x32x32xf32> to vector<32x32xf32>
    %cst_122 = arith.constant dense<0.000000e+00> : vector<8x32xf32>
    %119 = tpu.matmul %116, %118, %cst_122 {dimension_numbers = #tpu.dot_dimension_numbers<[1], [0], [0], [1], [0, 0, 1, 1], [], []>} : vector<8x32xf32>, vector<32x32xf32>, vector<8x32xf32> -> vector<8x32xf32>
    %c3_123 = arith.constant 3 : index
    %c1_124 = arith.constant 1 : index
    %c0_125 = arith.constant 0 : index
    %c0_126 = arith.constant 0 : index
    %120 = vector.load %arg6[%c3_123, %c1_124, %c0_125, %c0_126] : memref<4x2x1x32xf32, #tpu.memory_space<vmem>>, vector<1x1x1x32xf32>
    %121 = vector.shape_cast %120 : vector<1x1x1x32xf32> to vector<1x32xf32>
    %122 = vector.broadcast %121 : vector<1x32xf32> to vector<8x32xf32>
    %123 = arith.addf %119, %122 : vector<8x32xf32>
    %cst_127 = arith.constant 0.000000e+00 : f32
    %124 = vector.broadcast %cst_127 : f32 to vector<8x32xf32>
    %125 = arith.maximumf %123, %124 : vector<8x32xf32>
    %c3_128 = arith.constant 3 : index
    %c0_129 = arith.constant 0 : index
    %c0_130 = arith.constant 0 : index
    %126 = vector.load %arg7[%c3_128, %c0_129, %c0_130] : memref<4x32x4xf32, #tpu.memory_space<vmem>>, vector<1x32x4xf32>
    %127 = vector.shape_cast %126 : vector<1x32x4xf32> to vector<32x4xf32>
    %cst_131 = arith.constant dense<0.000000e+00> : vector<8x4xf32>
    %128 = tpu.matmul %125, %127, %cst_131 {dimension_numbers = #tpu.dot_dimension_numbers<[1], [0], [0], [1], [0, 0, 1, 1], [], []>} : vector<8x32xf32>, vector<32x4xf32>, vector<8x4xf32> -> vector<8x4xf32>
    %c3_132 = arith.constant 3 : index
    %c0_133 = arith.constant 0 : index
    %c0_134 = arith.constant 0 : index
    %129 = vector.load %arg8[%c3_132, %c0_133, %c0_134] : memref<4x1x4xf32, #tpu.memory_space<vmem>>, vector<1x1x4xf32>
    %130 = vector.shape_cast %129 : vector<1x1x4xf32> to vector<1x4xf32>
    %131 = vector.broadcast %130 : vector<1x4xf32> to vector<8x4xf32>
    %132 = arith.addf %128, %131 : vector<8x4xf32>
    %133 = arith.addf %67, %132 : vector<8x4xf32>
    %c0_135 = arith.constant 0 : index
    %c0_136 = arith.constant 0 : index
    %134 = vector.load %arg9[%c0_135, %c0_136] : memref<1x4xf32, #tpu.memory_space<vmem>>, vector<1x4xf32>
    %135 = vector.broadcast %134 : vector<1x4xf32> to vector<8x4xf32>
    %136 = arith.mulf %133, %135 : vector<8x4xf32>
    %c0_137 = arith.constant 0 : index
    %c0_138 = arith.constant 0 : index
    %137 = vector.load %arg11[%c0_137, %c0_138] : memref<8x8xf32, #tpu.memory_space<vmem>>, vector<8x4xf32>
    tpu.vector_store %arg11[%c0_137, %c0_138], %136 {strides = array<i32>} : memref<8x8xf32, #tpu.memory_space<vmem>>, vector<8x4xf32>,
    %c0_139 = arith.constant 0 : index
    %c0_140 = arith.constant 0 : index
    %138 = vector.load %arg10[%c0_139, %c0_140] : memref<1x4xf32, #tpu.memory_space<vmem>>, vector<1x4xf32>
    %139 = vector.broadcast %138 : vector<1x4xf32> to vector<8x4xf32>
    %140 = arith.mulf %100, %139 : vector<8x4xf32>
    %c0_141 = arith.constant 0 : index
    %c4 = arith.constant 4 : index
    %141 = vector.load %arg11[%c0_141, %c4] : memref<8x8xf32, #tpu.memory_space<vmem>>, vector<8x4xf32>
    tpu.vector_store %arg11[%c0_141, %c4], %140 {strides = array<i32>} : memref<8x8xf32, #tpu.memory_space<vmem>>, vector<8x4xf32>,
    return
  }
  func.func @transform_0(%arg0: i32) -> (i32, i32) {
    %c0_i32 = arith.constant 0 : i32
    %c0_i32_0 = arith.constant 0 : i32
    return %arg0, %c0_i32 : i32, i32
  }
  func.func @transform_1(%arg0: i32) -> (i32, i32) {
    %c0_i32 = arith.constant 0 : i32
    %c0_i32_0 = arith.constant 0 : i32
    return %arg0, %c0_i32 : i32, i32
  }
  func.func @transform_2(%arg0: i32) -> (i32, i32, i32) {
    %c0_i32 = arith.constant 0 : i32
    %c0_i32_0 = arith.constant 0 : i32
    %c0_i32_1 = arith.constant 0 : i32
    %c0_i32_2 = arith.constant 0 : i32
    return %c0_i32, %c0_i32_0, %c0_i32_1 : i32, i32, i32
  }
  func.func @transform_3(%arg0: i32) -> (i32, i32, i32) {
    %c0_i32 = arith.constant 0 : i32
    %c0_i32_0 = arith.constant 0 : i32
    %c0_i32_1 = arith.constant 0 : i32
    %c0_i32_2 = arith.constant 0 : i32
    return %c0_i32, %c0_i32_0, %c0_i32_1 : i32, i32, i32
  }
  func.func @transform_4(%arg0: i32) -> (i32, i32, i32, i32) {
    %c0_i32 = arith.constant 0 : i32
    %c0_i32_0 = arith.constant 0 : i32
    %c0_i32_1 = arith.constant 0 : i32
    %c0_i32_2 = arith.constant 0 : i32
    %c0_i32_3 = arith.constant 0 : i32
    return %c0_i32, %c0_i32_0, %c0_i32_1, %c0_i32_2 : i32, i32, i32, i32
  }
  func.func @transform_5(%arg0: i32) -> (i32, i32, i32, i32) {
    %c0_i32 = arith.constant 0 : i32
    %c0_i32_0 = arith.constant 0 : i32
    %c0_i32_1 = arith.constant 0 : i32
    %c0_i32_2 = arith.constant 0 : i32
    %c0_i32_3 = arith.constant 0 : i32
    return %c0_i32, %c0_i32_0, %c0_i32_1, %c0_i32_2 : i32, i32, i32, i32
  }
  func.func @transform_6(%arg0: i32) -> (i32, i32, i32) {
    %c0_i32 = arith.constant 0 : i32
    %c0_i32_0 = arith.constant 0 : i32
    %c0_i32_1 = arith.constant 0 : i32
    %c0_i32_2 = arith.constant 0 : i32
    return %c0_i32, %c0_i32_0, %c0_i32_1 : i32, i32, i32
  }
  func.func @transform_7(%arg0: i32) -> (i32, i32, i32) {
    %c0_i32 = arith.constant 0 : i32
    %c0_i32_0 = arith.constant 0 : i32
    %c0_i32_1 = arith.constant 0 : i32
    %c0_i32_2 = arith.constant 0 : i32
    return %c0_i32, %c0_i32_0, %c0_i32_1 : i32, i32, i32
  }
  func.func @transform_8(%arg0: i32) -> (i32, i32) {
    %c0_i32 = arith.constant 0 : i32
    %c0_i32_0 = arith.constant 0 : i32
    %c0_i32_1 = arith.constant 0 : i32
    return %c0_i32, %c0_i32_0 : i32, i32
  }
  func.func @transform_9(%arg0: i32) -> (i32, i32) {
    %c0_i32 = arith.constant 0 : i32
    %c0_i32_0 = arith.constant 0 : i32
    %c0_i32_1 = arith.constant 0 : i32
    return %c0_i32, %c0_i32_0 : i32, i32
  }
  func.func @transform_10(%arg0: i32) -> (i32, i32) {
    %c0_i32 = arith.constant 0 : i32
    %c0_i32_0 = arith.constant 0 : i32
    return %arg0, %c0_i32 : i32, i32
  }
}

</mosaic_0001>

<bundles_post_ra>
// kernel: tpu_custom_call.1
= control target key start
LH: loop header
LB: loop body
LE: loop exit
PB: predicated region body
PF: predicated region fallthrough
CT: control target
= control target key end

     0   :  { %15 = vsyncpa [#allocation3], 0  ;;  %s2371_s13 = smov 0   ;;  %s2642_s0 = inlined_call_operand.vmem [shape: f32[16,4], index: 0, kind: input, shape index: {}]   ;;  %s2643_s1 = inlined_call_operand.vmem [shape: f32[16,4], index: 1, kind: input, shape index: {}]   ;;  %s2644_s2 = inlined_call_operand.vmem [shape: f32[4,4,32], index: 2, kind: input, shape index: {}]   ;;  %s2645_s3 = inlined_call_operand.vmem [shape: f32[4,1,32], index: 3, kind: input, shape index: {}]   ;;  %s2646_s4 = inlined_call_operand.hbm [shape: f32[4,2,32,32], index: 4, kind: input, shape index: {}]   ;;  %s2647_s5 = inlined_call_operand.vmem [shape: f32[4,2,1,32], index: 5, kind: input, shape index: {}]   ;;  %s2648_s6 = inlined_call_operand.vmem [shape: f32[4,32,4], index: 6, kind: input, shape index: {}]   ;;  %s2649_s7 = inlined_call_operand.vmem [shape: f32[4,1,4], index: 7, kind: input, shape index: {}]   ;;  %s2650_s8 = inlined_call_operand.vmem [shape: f32[1,4], index: 8, kind: input, shape index: {}]   ;;  %s2651_s9 = inlined_call_operand.vmem [shape: f32[1,4], index: 9, kind: input, shape index: {}]   ;;  %s2652_s10 = inlined_call_operand.vmem [shape: f32[16,8], index: 10, kind: output, shape index: {}]  }
   0x1 LB: > { %s2377_s14 = sadd.s32 4294967295, %s2307_s13   ;;  %p1876_p0 = scmp.ge.s32.totalorder %s2307_s13, 1  ;;  %s2307_s13 = sphi %s2371_s13, %s21_s13  }
   0x2   : > { %p272_p1 = scmp.lt.s32.totalorder %s2307_s13, 3  ;;  %s2309_s15 = smov [#allocation2]  }
   0x3   : > { %s290_s16 = sshll.u32 %s2309_s15, 4  ;;  %p2653_p3 = scmp.eq.s32.totalorder %s2377_s14, 0  ;;  %s291_s16 = int_to_ptr.vmem [resolvable:$true] %s290_s16 }
   0x4   : > { %p2381_p2 = pnand %p1876_p0, %p272_p1  ;;  %s2269_s21 = scalar_lea.hbm %s2646_s4, 4096 }
   0x5   : > { %p2270_p6 = scmp.ne.s32.totalorder %s2646_s4, %s2269_s21  ;;  %p2276_p10 = scmp.lt.u32.totalorder %s2269_s21, %s2646_s4 }
   0x6   : > { %s2655_s17 = scalar_select %p2381_p2, 1, 0 }
   0x7   : > { %p2248_p4 = pneg %p2381_p2 }
   0x9   : > { %p2390_p5 = pnand %p2653_p3, %p2248_p4 }
   0xb   : > { %p2271_p7 = pneg %p2390_p5 }
   0xd   : > { %p2272_p8 = pnand %p2271_p7, %p2270_p6 }
   0xf   : > { %p2273_p9 = pneg %p2272_p8 }
  0x11   : > { %p2278_p11 = pnand %p2276_p10, %p2273_p9 }
  0x13   : > { %2281 = shalt.err (!%p2278_p11)
}
  0x14   : > { %s2282_s26 = scalar_lea.vmem %s291_s16, 4096  ;;  %p2290_p1 = scmp.lt.s32.totalorder %s291_s16, %s291_s16 }
  0x15   : > { %p2283_p12 = scmp.ne.s32.totalorder %s291_s16, %s2282_s26  ;;  %p2291_p4 = scmp.lt.s32.totalorder %s2282_s26, %s2282_s26 }
  0x17   : > { %p2285_p13 = pnand %p2283_p12, %p2271_p7  ;;  %p2292_p3 = por %p2291_p4, %p2290_p1 }
  0x19   : > { %p2286_p0 = pneg %p2285_p13 }
  0x1b   : > { %p2293_p2 = pnand %p2292_p3, %p2286_p0 }
  0x1d   : > { %2296 = shalt.err (!%p2293_p2)
}
  0x1e   : > { %s2310_s27 = smov 128   ;;  %s2311_s28 = smov 8  }
  0x1f   : > { %2251 = dma.hbm_to_vmem [thread:$0]  (!%p2390_p5), %s2646_s4, 4096, %s291_s16, [#allocation3], %s2310_s27, %s2310_s27, %s2311_s28  }
  0x20   : > { %p2657_p6 = scmp.ne.s32.totalorder %s2655_s17, 0 }
  0x21   : > { %p2658_p8 = scmp.eq.s32.totalorder (!%p2657_p6), %s2377_s14, 0 }
  0x22   : > { %335 = sbr.rel (%p2657_p6) target bundleno = 3500 (0xdac), region = 60 }
  0x29   : > { %2302 = dma.done.wait (%p2658_p8), [#allocation3], 4096   ;;  %p2659_p7 = pmov %p2658_p8 }
  0x2a   : > { %p375_p2 = scmp.lt.s32.totalorder %s2377_s14, 1  ;;  %v2312_v0 = vmov 0.0   ;;  %vm2313_vm0 = vmmov 0   ;;  %v2314_v1 = vmov 0.0|0.0   ;;  %vm401_vm1 = vcmask 1043456   ;;  %v475_v4 = vld [vmem:[#allocation2] sm:$0xff] }
  0x2b   : > { %2304 = vsyncadd (%p2659_p7), [#allocation3], 4294963200  ;;  %2020 = vmatprep.subr.mxu1 %v2312_v0  ;;  %2022 = vmatprep.mubr.msk.f32.mxu1 %vm2313_vm0, %v2312_v0  ;;  %vm397_vm2 = vcmask 31744   ;;  %v389_v2 = vld [vmem:[%s2644_s2] sm:$0xf]  ;;  %v476_v5 = vld [vmem:[#allocation2 + $0x8] sm:$0xff] }
  0x2c   : > { %s2661_s14 = smov (!%p375_p2, %s2377_s14), 1  ;;  %2178 = vmatprep.subr.bf16.mxu0 %v2314_v1  ;;  %2044 = vmatprep.mubr.msk.f32.mxu0 %vm2313_vm0, %v2312_v0  ;;  %v2173_v6 = vpack.c.bf16 %v476_v5, %v475_v4  ;;  %v477_v7 = vld [vmem:[#allocation2 + $0x10] sm:$0xff]  ;;  %v478_v8 = vld [vmem:[#allocation2 + $0x18] sm:$0xff]  ;;  %v562_v10 = vld [vmem:[#allocation2 + $0x20] sm:$0xff]  ;;  %vm486_vm3 = vcmask 261120   ;;  %s2315_s23 = smov 4  }
  0x2d   : > { %s2424_s11 = sshll.u32 %s2661_s14, 3  ;;  %2021 = vmatpush3.msk.msra.mxu1 %vm401_vm1, %v389_v2  ;;  %v2176_v9 = vpack.c.bf16 %v478_v8, %v477_v7  ;;  %v563_v11 = vld [vmem:[#allocation2 + $0x28] sm:$0xff]  ;;  %v1884_v13 = vld [vmem:[%s2645_s3] ss:$0 sm:$0xff]  ;;  %v564_v17 = vld [vmem:[#allocation2 + $0x30] sm:$0xff]  ;;  %vm1795_vm4 = vcmask 64544  }
  0x2e   : > { %s378_s16 = scalar_lea.vmem %s2642_s0, %s2424_s11  ;;  %2172 = vmatprep.subr.bf16.mxu1 %v2314_v1  ;;  %v2179_v12 = vpack.c.bf16 %v563_v11, %v562_v10  ;;  %v565_v18 = vld [vmem:[#allocation2 + $0x38] sm:$0xff]  ;;  %v648_v20 = vld [vmem:[%s2648_s6] sm:$0xff]  ;;  %v649_v21 = vld [vmem:[%s2648_s6 + $0x8] sm:$0xff]  ;;  %s382_s14 = scalar_lea.vmem %s2643_s1, %s2424_s11 }
  0x2f   : > { %v2433_v3 = vld [vmem:[%s378_s16] sm:$0xff]  ;;  %v2182_v19 = vpack.c.bf16 %v565_v18, %v564_v17  ;;  %v2185_v22 = vpack.c.bf16 %v649_v21, %v648_v20  ;;  %v650_v28 = vld [vmem:[%s2648_s6 + $0x10] sm:$0xff]  ;;  %v651_v29 = vld [vmem:[%s2648_s6 + $0x18] sm:$0xff]  ;;  %s386_s26 = scalar_lea.vmem %s2652_s10, %s2424_s11 }
  0x30   : > { %2023 = vmatmul.mubr.msk.f32.vlgmr.msra.gmra.mrb[0].mxu1 %vm397_vm2, %v2433_v3  ;;  %2180 = vmatpush3.bf16.msra.mxu0 %v2179_v12  ;;  %v1887_v23 = vld [vmem:[%s2647_s5] ss:$0 sm:$0xff]  ;;  %v2188_v30 = vpack.c.bf16 %v651_v29, %v650_v28  ;;  %v1890_v31 = vld [vmem:[%s2647_s5 + $0x1] ss:$0 sm:$0xff]  ;;  %v1894_v36 = vld [vmem:[%s2644_s2 + $0x4] sm:$0xf] }
  0x31   : > { %2033 = vmatprep.mubr.msk.f32.mxu1 %vm2313_vm0, %v2312_v0  ;;  %2174 = vmatpush3.bf16.msra.mxu1 %v2173_v6  ;;  %v1892_v37 = vld [vmem:[%s2649_s7] ss:$0 sm:$0xff]  ;;  %v821_v39 = vld [vmem:[#allocation2 + $0x48] sm:$0xff]  ;;  %v822_v46 = vld [vmem:[#allocation2 + $0x50] sm:$0xff] }
  0x32   : > { %2175 = vmatprep.subr.bf16.mxu1 %v2314_v1  ;;  %2181 = vmatprep.subr.bf16.mxu0 %v2314_v1  ;;  %v820_v38 = vld [vmem:[#allocation2 + $0x40] sm:$0xff]  ;;  %v823_v47 = vld [vmem:[#allocation2 + $0x58] sm:$0xff]  ;;  %v908_v50 = vld [vmem:[#allocation2 + $0x68] sm:$0xff] }
  0x33   : > { %v388_v40 = vld [vmem:[%s382_s14] sm:$0xff]  ;;  %v2191_v44 = vpack.c.bf16 %v821_v39, %v820_v38  ;;  %v2194_v48 = vpack.c.bf16 %v823_v47, %v822_v46  ;;  %v909_v56 = vld [vmem:[#allocation2 + $0x70] sm:$0xff]  ;;  %v910_v57 = vld [vmem:[#allocation2 + $0x78] sm:$0xff] }
  0x34   : > { %2183 = vmatpush3.bf16.msra.mxu0 %v2182_v19  ;;  %v907_v49 = vld [vmem:[#allocation2 + $0x60] sm:$0xff]  ;;  %v2200_v58 = vpack.c.bf16 %v910_v57, %v909_v56  ;;  %v1906_v60 = vld [vmem:[%s2648_s6 + $0x28] sm:$0xff]  ;;  %v1907_v6 = vld [vmem:[%s2648_s6 + $0x30] sm:$0xff] }
  0x35   : > { %2177 = vmatpush3.bf16.msra.mxu1 %v2176_v9  ;;  %2058 = vmatprep.subr.mxu0 %v2312_v0  ;;  %v2197_v51 = vpack.c.bf16 %v908_v50, %v907_v49  ;;  %v1896_v52 = vld [vmem:[%s2645_s3 + $0x1] ss:$0 sm:$0xff]  ;;  %v1900_v62 = vld [vmem:[%s2647_s5 + $0x2] ss:$0 sm:$0xff]  ;;  %v1908_v7 = vld [vmem:[%s2648_s6 + $0x38] sm:$0xff] }
  0x36   : > { %2184 = vmatprep.subr.bf16.mxu1 %v2314_v1  ;;  %v1905_v59 = vld [vmem:[%s2648_s6 + $0x20] sm:$0xff]  ;;  %v2206_v8 = vpack.c.bf16 %v1908_v7, %v1907_v6  ;;  %v1168_v17 = vld [vmem:[#allocation2 + $0x88] sm:$0xff] }
  0x37   : > { %v2203_v61 = vpack.c.bf16 %v1906_v60, %v1905_v59  ;;  %v1903_v9 = vld [vmem:[%s2647_s5 + $0x3] ss:$0 sm:$0xff]  ;;  %v1918_v38 = vld [vmem:[%s2647_s5 + $0x4] ss:$0 sm:$0xff]  ;;  %v1921_v47 = vld [vmem:[%s2647_s5 + $0x5] ss:$0 sm:$0xff] }
  0x38   : > { %v1949_v59 = vld [vmem:[%s2651_s9] ss:$0 sm:$0xff]  ;;  %v1602_v6 = vld [vmem:[#allocation2 + $0xe8] sm:$0xff]  ;;  %v1932_v7 = vld [vmem:[%s2645_s3 + $0x3] ss:$0 sm:$0xff] }
 0x103   : > { %v471_v14 = vpop.f32.mrb[0].mxu1 }
 0x104   : > { %v472_v15 = vadd.f32 %v1884_v13, %v471_v14  ;;  %v2024_v16 = vpop.f32.mrb[1].mxu1  ;;  %v1912_v14 = vld [vmem:[%s2644_s2 + $0x8] sm:$0xf] }
 0x105   : > { %v1167_v16 = vld [vmem:[#allocation2 + $0x80] sm:$0xff] }
 0x106   : > { %2034 = vmatmul.mubr.msk.f32.vlgmr.msra.gmra.mrb[2].mxu1 %vm486_vm3, %v472_v15  ;;  %v1910_v15 = vld [vmem:[%s2649_s7 + $0x1] ss:$0 sm:$0xff]  ;;  %v2209_v21 = vpack.c.bf16 %v1168_v17, %v1167_v16 }
 0x107   : > { %2055 = vmatprep.mubr.msk.f32.mxu1 %vm2313_vm0, %v2312_v0  ;;  %2186 = vmatpush3.bf16.msra.mxu1 %v2185_v22 }
 0x108   : > { %2187 = vmatprep.subr.bf16.mxu1 %v2314_v1 }
 0x10b   : > { %2189 = vmatpush3.bf16.msra.mxu1 %v2188_v30 }
 0x10c   : > { %2196 = vmatprep.subr.bf16.mxu1 %v2314_v1 }
 0x1d9   : > { %v556_v24 = vpop.f32.mrb[2].mxu1 }
 0x1da   : > { %v557_v25 = vadd.f32 %v1887_v23, %v556_v24  ;;  %v2035_v26 = vpop.f32.mrb[3].mxu1  ;;  %v1169_v23 = vld [vmem:[#allocation2 + $0x90] sm:$0xff]  ;;  %v1170_v24 = vld [vmem:[#allocation2 + $0x98] sm:$0xff] }
 0x1db   : > { %v1254_v26 = vld [vmem:[#allocation2 + $0xa0] sm:$0xff] }
 0x1dc   : > { %v560_v27 = vmax.f32 %v557_v25, 0.0  ;;  %v2212_v25 = vpack.c.bf16 %v1170_v24, %v1169_v23  ;;  %v1944_v23 = vld [vmem:[%s2648_s6 + $0x78] sm:$0xff]  ;;  %v1939_v24 = vld [vmem:[%s2647_s5 + $0x7] ss:$0 sm:$0xff] }
 0x1de   : > { %2045 = vmatmul.mubr.msk.f32.vlgmr.msra.gmra.mrb[0].mxu0 %vm486_vm3, %v560_v27  ;;  %v1255_v27 = vld [vmem:[#allocation2 + $0xa8] sm:$0xff] }
 0x1df   : > { %2060 = vmatprep.mubr.msk.f32.mxu0 %vm2313_vm0, %v2312_v0  ;;  %2059 = vmatpush3.msk.msra.mxu0 %vm401_vm1, %v1894_v36  ;;  %v2215_v28 = vpack.c.bf16 %v1255_v27, %v1254_v26  ;;  %v1924_v36 = vld [vmem:[%s2648_s6 + $0x48] sm:$0xff] }
 0x1e0   : > { %2190 = vmatprep.subr.bf16.mxu0 %v2314_v1 }
 0x2b1   : > { %v643_v32 = vpop.f32.mrb[0].mxu0 }
 0x2b2   : > { %v644_v33 = vadd.f32 %v1890_v31, %v643_v32  ;;  %v2046_v34 = vpop.f32.mrb[1].mxu0  ;;  %v1256_v32 = vld [vmem:[#allocation2 + $0xb0] sm:$0xff] }
 0x2b4   : > { %v647_v35 = vmax.f32 %v644_v33, 0.0  ;;  %v1257_v33 = vld [vmem:[#allocation2 + $0xb8] sm:$0xff] }
 0x2b5   : > { %v2218_v34 = vpack.c.bf16 %v1257_v33, %v1256_v32  ;;  %v1948_v32 = vld [vmem:[%s2650_s8] ss:$0 sm:$0xff] }
 0x2b6   : > { %2056 = vmatmul.mubr.msk.f32.vlgmr.msra.gmra.mrb[4].mxu1 %vm486_vm3, %v647_v35  ;;  %v1923_v35 = vld [vmem:[%s2648_s6 + $0x40] sm:$0xff] }
 0x2b7   : > { %2082 = vmatprep.mubr.msk.f32.mxu1 %vm2313_vm0, %v2312_v0  ;;  %2198 = vmatpush3.bf16.msra.mxu1 %v2197_v51 }
 0x2b8   : > { %2199 = vmatprep.subr.bf16.mxu1 %v2314_v1 }
 0x2bb   : > { %2201 = vmatpush3.bf16.msra.mxu1 %v2200_v58 }
 0x2bc   : > { %2096 = vmatprep.subr.mxu1 %v2312_v0 }
 0x389   : > { %v728_v41 = vpop.f32.mrb[4].mxu1 }
 0x38a   : > { %v729_v42 = vadd.f32 %v1892_v37, %v728_v41  ;;  %v2057_v43 = vpop.f32.mrb[5].mxu1  ;;  %v2221_v37 = vpack.c.bf16 %v1924_v36, %v1923_v35 }
 0x38b   : > { %v1925_v43 = vld [vmem:[%s2648_s6 + $0x50] sm:$0xff] }
 0x38c   : > { %v2489_v45 = vadd.f32 %v729_v42, %v388_v40 }
 0x38e   : > { %2061 = vmatmul.mubr.msk.f32.vlgmr.msra.gmra.mrb[2].mxu0 %vm397_vm2, %v2489_v45 }
 0x38f   : > { %2192 = vmatpush3.bf16.msra.mxu0 %v2191_v44  ;;  %2071 = vmatprep.mubr.msk.f32.mxu0 %vm2313_vm0, %v2312_v0  ;;  %v1926_v44 = vld [vmem:[%s2648_s6 + $0x58] sm:$0xff] }
 0x390   : > { %2193 = vmatprep.subr.bf16.mxu0 %v2314_v1  ;;  %v2224_v46 = vpack.c.bf16 %v1926_v44, %v1925_v43 }
 0x393   : > { %2195 = vmatpush3.bf16.msra.mxu0 %v2194_v48 }
 0x394   : > { %2202 = vmatprep.subr.bf16.mxu0 %v2314_v1 }
 0x461   : > { %v815_v53 = vpop.f32.mrb[2].mxu0 }
 0x462   : > { %v816_v54 = vadd.f32 %v1896_v52, %v815_v53  ;;  %v2062_v55 = vpop.f32.mrb[3].mxu0  ;;  %v1930_v52 = vld [vmem:[%s2644_s2 + $0xc] sm:$0xf]  ;;  %v1928_v53 = vld [vmem:[%s2649_s7 + $0x2] ss:$0 sm:$0xff] }
 0x463   : > { %v1515_v55 = vld [vmem:[#allocation2 + $0xc8] sm:$0xff] }
 0x464   : > { %2072 = vmatmul.mubr.msk.f32.vlgmr.msra.gmra.mrb[4].mxu0 %vm486_vm3, %v816_v54  ;;  %v1514_v54 = vld [vmem:[#allocation2 + $0xc0] sm:$0xff] }
 0x465   : > { %2093 = vmatprep.mubr.msk.f32.mxu0 %vm2313_vm0, %v2312_v0  ;;  %2204 = vmatpush3.bf16.msra.mxu0 %v2203_v61  ;;  %v2227_v60 = vpack.c.bf16 %v1515_v55, %v1514_v54 }
 0x466   : > { %2205 = vmatprep.subr.bf16.mxu0 %v2314_v1 }
 0x469   : > { %2207 = vmatpush3.bf16.msra.mxu0 %v2206_v8 }
 0x46a   : > { %2214 = vmatprep.subr.bf16.mxu0 %v2314_v1 }
 0x537   : > { %v901_v63 = vpop.f32.mrb[4].mxu0 }
 0x538   : > { %v902_v2 = vadd.f32 %v1900_v62, %v901_v63  ;;  %v2073_v4 = vpop.f32.mrb[5].mxu0  ;;  %v1516_v63 = vld [vmem:[#allocation2 + $0xd0] sm:$0xff] }
 0x53a   : > { %v905_v5 = vmax.f32 %v902_v2, 0.0  ;;  %v1517_v2 = vld [vmem:[#allocation2 + $0xd8] sm:$0xff] }
 0x53b   : > { %v2230_v4 = vpack.c.bf16 %v1517_v2, %v1516_v63 }
 0x53c   : > { %2083 = vmatmul.mubr.msk.f32.vlgmr.msra.gmra.mrb[6].mxu1 %vm486_vm3, %v905_v5  ;;  %v1601_v5 = vld [vmem:[#allocation2 + $0xe0] sm:$0xff] }
 0x53d   : > { %2098 = vmatprep.mubr.msk.f32.mxu1 %vm2313_vm0, %v2312_v0  ;;  %2097 = vmatpush3.msk.msra.mxu1 %vm401_vm1, %v1912_v14  ;;  %v1941_v14 = vld [vmem:[%s2648_s6 + $0x60] sm:$0xff] }
 0x53e   : > { %2208 = vmatprep.subr.bf16.mxu1 %v2314_v1 }
 0x60f   : > { %v988_v10 = vpop.f32.mrb[6].mxu1 }
 0x610   : > { %v989_v11 = vadd.f32 %v1903_v9, %v988_v10  ;;  %v2084_v12 = vpop.f32.mrb[7].mxu1 }
 0x611   : > { %v1604_v12 = vld [vmem:[#allocation2 + $0xf8] sm:$0xff] }
 0x612   : > { %v992_v13 = vmax.f32 %v989_v11, 0.0  ;;  %v1603_v11 = vld [vmem:[#allocation2 + $0xf0] sm:$0xff] }
 0x614   : > { %2094 = vmatmul.mubr.msk.f32.vlgmr.msra.gmra.mrb[6].mxu0 %vm486_vm3, %v992_v13  ;;  %v2236_v13 = vpack.c.bf16 %v1604_v12, %v1603_v11 }
 0x615   : > { %2120 = vmatprep.mubr.msk.f32.mxu0 %vm2313_vm0, %v2312_v0  ;;  %2216 = vmatpush3.bf16.msra.mxu0 %v2215_v28 }
 0x616   : > { %2217 = vmatprep.subr.bf16.mxu0 %v2314_v1 }
 0x619   : > { %2219 = vmatpush3.bf16.msra.mxu0 %v2218_v34 }
 0x61a   : > { %2134 = vmatprep.subr.mxu0 %v2312_v0 }
 0x6e7   : > { %v1075_v18 = vpop.f32.mrb[6].mxu0 }
 0x6e8   : > { %v1076_v19 = vadd.f32 %v1910_v15, %v1075_v18  ;;  %v2095_v20 = vpop.f32.mrb[7].mxu0  ;;  %v1942_v15 = vld [vmem:[%s2648_s6 + $0x68] sm:$0xff] }
 0x6e9   : > { %v2239_v16 = vpack.c.bf16 %v1942_v15, %v1941_v14 }
 0x6ea   : > { %v2540_v22 = vadd.f32 %v1076_v19, %v2433_v3  ;;  %v1914_v3 = vld [vmem:[%s2645_s3 + $0x2] ss:$0 sm:$0xff] }
 0x6ec   : > { %2099 = vmatmul.mubr.msk.f32.vlgmr.msra.gmra.mrb[8].mxu1 %vm397_vm2, %v2540_v22 }
 0x6ed   : > { %2210 = vmatpush3.bf16.msra.mxu1 %v2209_v21  ;;  %2109 = vmatprep.mubr.msk.f32.mxu1 %vm2313_vm0, %v2312_v0  ;;  %v1943_v21 = vld [vmem:[%s2648_s6 + $0x70] sm:$0xff] }
 0x6ee   : > { %2211 = vmatprep.subr.bf16.mxu1 %v2314_v1 }
 0x6f1   : > { %2213 = vmatpush3.bf16.msra.mxu1 %v2212_v25 }
 0x6f2   : > { %2220 = vmatprep.subr.bf16.mxu1 %v2314_v1 }
 0x7bf   : > { %v1162_v29 = vpop.f32.mrb[8].mxu1 }
 0x7c0   : > { %v1163_v30 = vadd.f32 %v1914_v3, %v1162_v29  ;;  %v2100_v31 = vpop.f32.mrb[9].mxu1  ;;  %v1946_v3 = vld [vmem:[%s2649_s7 + $0x3] ss:$0 sm:$0xff] }
 0x7c2   : > { %2110 = vmatmul.mubr.msk.f32.vlgmr.msra.gmra.mrb[10].mxu1 %vm486_vm3, %v1163_v30 }
 0x7c3   : > { %2131 = vmatprep.mubr.msk.f32.mxu1 %vm2313_vm0, %v2312_v0  ;;  %2222 = vmatpush3.bf16.msra.mxu1 %v2221_v37 }
 0x7c4   : > { %2223 = vmatprep.subr.bf16.mxu1 %v2314_v1 }
 0x7c7   : > { %2225 = vmatpush3.bf16.msra.mxu1 %v2224_v46 }
 0x7c8   : > { %2232 = vmatprep.subr.bf16.mxu1 %v2314_v1 }
 0x895   : > { %v1248_v39 = vpop.f32.mrb[10].mxu1 }
 0x896   : > { %v1249_v40 = vadd.f32 %v1918_v38, %v1248_v39  ;;  %v2111_v41 = vpop.f32.mrb[11].mxu1 }
 0x898   : > { %v1252_v42 = vmax.f32 %v1249_v40, 0.0 }
 0x89a   : > { %2121 = vmatmul.mubr.msk.f32.vlgmr.msra.gmra.mrb[8].mxu0 %vm486_vm3, %v1252_v42 }
 0x89b   : > { %2136 = vmatprep.mubr.msk.f32.mxu0 %vm2313_vm0, %v2312_v0  ;;  %2135 = vmatpush3.msk.msra.mxu0 %vm401_vm1, %v1930_v52 }
 0x89c   : > { %2226 = vmatprep.subr.bf16.mxu0 %v2314_v1 }
 0x96d   : > { %v1335_v48 = vpop.f32.mrb[8].mxu0 }
 0x96e   : > { %v1336_v49 = vadd.f32 %v1921_v47, %v1335_v48  ;;  %v2122_v50 = vpop.f32.mrb[9].mxu0 }
 0x970   : > { %v1339_v51 = vmax.f32 %v1336_v49, 0.0 }
 0x972   : > { %2132 = vmatmul.mubr.msk.f32.vlgmr.msra.gmra.mrb[12].mxu1 %vm486_vm3, %v1339_v51 }
 0x973   : > { %2158 = vmatprep.mubr.msk.f32.mxu1 %vm2313_vm0, %v2312_v0 }
 0xa45   : > { %v1422_v56 = vpop.f32.mrb[12].mxu1 }
 0xa46   : > { %v1423_v57 = vadd.f32 %v1928_v53, %v1422_v56  ;;  %v2133_v58 = vpop.f32.mrb[13].mxu1 }
 0xa48   : > { %v1426_v61 = vadd.f32 %v1423_v57, %v2489_v45  ;;  %v2233_v45 = vpack.c.bf16 %v1602_v6, %v1601_v5 }
 0xa4a   : > { %2137 = vmatmul.mubr.msk.f32.vlgmr.msra.gmra.mrb[10].mxu0 %vm397_vm2, %v1426_v61  ;;  %v1790_v62 = vmul.f32 %v1949_v59, %v1426_v61  ;;  %2234 = vmatpush3.bf16.msra.mxu1 %v2233_v45 }
 0xa4b   : > { %2228 = vmatpush3.bf16.msra.mxu0 %v2227_v60  ;;  %2147 = vmatprep.mubr.msk.f32.mxu0 %vm2313_vm0, %v2312_v0 }
 0xa4c   : > { %1792 = vrot.lane.b32.xlu0 %v1790_v62, %s2315_s23  ;;  %2229 = vmatprep.subr.bf16.mxu0 %v2314_v1 }
 0xa4d   : > { %2235 = vmatprep.subr.bf16.mxu1 %v2314_v1 }
 0xa4e   : > { %2237 = vmatpush3.bf16.msra.mxu1 %v2236_v13 }
 0xa4f   : > { %2231 = vmatpush3.bf16.msra.mxu0 %v2230_v4 }
 0xa50   : > { %2238 = vmatprep.subr.bf16.mxu0 %v2314_v1 }
 0xabe   : > { %v1793_v35 = vpop.permute.xlu0 %1792 }
 0xb1d   : > { %v1509_v8 = vpop.f32.mrb[10].mxu0 }
 0xb1e   : > { %v1510_v9 = vadd.f32 %v1932_v7, %v1509_v8  ;;  %v2138_v10 = vpop.f32.mrb[11].mxu0 }
 0xb20   : > { %2148 = vmatmul.mubr.msk.f32.vlgmr.msra.gmra.mrb[12].mxu0 %vm486_vm3, %v1510_v9 }
 0xb21   : > { %2169 = vmatprep.mubr.msk.f32.mxu0 %vm2313_vm0, %v2312_v0  ;;  %2240 = vmatpush3.bf16.msra.mxu0 %v2239_v16  ;;  %v1936_v0 = vld [vmem:[%s2647_s5 + $0x6] ss:$0 sm:$0xff] }
 0xb22   : > { %2241 = vmatprep.subr.bf16.mxu0 %v2314_v1  ;;  %v2242_v1 = vpack.c.bf16 %v1944_v23, %v1943_v21 }
 0xb25   : > { %2243 = vmatpush3.bf16.msra.mxu0 %v2242_v1 }
 0xbf3   : > { %v1595_v17 = vpop.f32.mrb[12].mxu0 }
 0xbf4   : > { %v1596_v18 = vadd.f32 %v1936_v0, %v1595_v17  ;;  %v2149_v19 = vpop.f32.mrb[13].mxu0 }
 0xbf6   : > { %v1599_v20 = vmax.f32 %v1596_v18, 0.0 }
 0xbf8   : > { %2159 = vmatmul.mubr.msk.f32.vlgmr.msra.gmra.mrb[14].mxu1 %vm486_vm3, %v1599_v20 }
 0xccb   : > { %v1682_v25 = vpop.f32.mrb[14].mxu1 }
 0xccc   : > { %v1683_v26 = vadd.f32 %v1939_v24, %v1682_v25  ;;  %v2160_v27 = vpop.f32.mrb[15].mxu1 }
 0xcce   : > { %v1686_v28 = vmax.f32 %v1683_v26, 0.0 }
 0xcd0   : > { %2170 = vmatmul.mubr.msk.f32.vlgmr.msra.gmra.mrb[14].mxu0 %vm486_vm3, %v1686_v28 }
 0xda3   : > { %v1769_v29 = vpop.f32.mrb[14].mxu0 }
 0xda4   : > { %v1770_v30 = vadd.f32 %v1946_v3, %v1769_v29  ;;  %v2171_v31 = vpop.f32.mrb[15].mxu0 }
 0xda6   : > { %v1773_v33 = vadd.f32 %v1770_v30, %v2540_v22 }
 0xda8   : > { %v1781_v34 = vmul.f32 %v1948_v32, %v1773_v33 }
 0xdaa   : > { %1782 = vst.msk [vmem:[%s386_s26] sm:$0xff] %vm397_vm2, %v1781_v34 }
 0xdab   : > { %1796 = vst.msk [vmem:[%s386_s26] sm:$0xff] %vm1795_vm4, %v1793_v35 }
 0xdac PF: > { %s21_s13 = sadd.s32 1, %s2307_s13  }
 0xdad   : > { %p18_p3 = scmp.ge.s32.totalorder %s21_s13, 4  }
 0xdaf   :  { %20 = sbr.rel (!%p18_p3) target bundleno = 1 (0x1), region = 124 }
 0xdb6   :  { %1816 = vsyncpa [#allocation3], 1 }
 0xdb7   :  { %1818 = vsyncpa [#allocation3 + $0x1], 1 }

// kernel: tpu_custom_call.1
= control target key start
LH: loop header
LB: loop body
LE: loop exit
PB: predicated region body
PF: predicated region fallthrough
CT: control target
= control target key end

     0   :  { %15 = vsyncpa [#allocation3], 0  ;;  %s2371_s13 = smov 0   ;;  %s2642_s0 = inlined_call_operand.vmem [shape: f32[16,4], index: 0, kind: input, shape index: {}]   ;;  %s2643_s1 = inlined_call_operand.vmem [shape: f32[16,4], index: 1, kind: input, shape index: {}]   ;;  %s2644_s2 = inlined_call_operand.vmem [shape: f32[4,4,32], index: 2, kind: input, shape index: {}]   ;;  %s2645_s3 = inlined_call_operand.vmem [shape: f32[4,1,32], index: 3, kind: input, shape index: {}]   ;;  %s2646_s4 = inlined_call_operand.hbm [shape: f32[4,2,32,32], index: 4, kind: input, shape index: {}]   ;;  %s2647_s5 = inlined_call_operand.vmem [shape: f32[4,2,1,32], index: 5, kind: input, shape index: {}]   ;;  %s2648_s6 = inlined_call_operand.vmem [shape: f32[4,32,4], index: 6, kind: input, shape index: {}]   ;;  %s2649_s7 = inlined_call_operand.vmem [shape: f32[4,1,4], index: 7, kind: input, shape index: {}]   ;;  %s2650_s8 = inlined_call_operand.vmem [shape: f32[1,4], index: 8, kind: input, shape index: {}]   ;;  %s2651_s9 = inlined_call_operand.vmem [shape: f32[1,4], index: 9, kind: input, shape index: {}]   ;;  %s2652_s10 = inlined_call_operand.vmem [shape: f32[16,8], index: 10, kind: output, shape index: {}]  }
   0x1 LB: > { %s2377_s14 = sadd.s32 4294967295, %s2307_s13   ;;  %p1876_p0 = scmp.ge.s32.totalorder %s2307_s13, 1  ;;  %s2307_s13 = sphi %s2371_s13, %s21_s13  }
   0x2   : > { %p272_p1 = scmp.lt.s32.totalorder %s2307_s13, 3  ;;  %s2309_s15 = smov [#allocation2]  }
   0x3   : > { %s290_s16 = sshll.u32 %s2309_s15, 4  ;;  %p2653_p3 = scmp.eq.s32.totalorder %s2377_s14, 0  ;;  %s291_s16 = int_to_ptr.vmem [resolvable:$true] %s290_s16 }
   0x4   : > { %p2381_p2 = pnand %p1876_p0, %p272_p1  ;;  %s2269_s21 = scalar_lea.hbm %s2646_s4, 4096 }
   0x5   : > { %p2270_p6 = scmp.ne.s32.totalorder %s2646_s4, %s2269_s21  ;;  %p2276_p10 = scmp.lt.u32.totalorder %s2269_s21, %s2646_s4 }
   0x6   : > { %s2655_s17 = scalar_select %p2381_p2, 1, 0 }
   0x7   : > { %p2248_p4 = pneg %p2381_p2 }
   0x9   : > { %p2390_p5 = pnand %p2653_p3, %p2248_p4 }
   0xb   : > { %p2271_p7 = pneg %p2390_p5 }
   0xd   : > { %p2272_p8 = pnand %p2271_p7, %p2270_p6 }
   0xf   : > { %p2273_p9 = pneg %p2272_p8 }
  0x11   : > { %p2278_p11 = pnand %p2276_p10, %p2273_p9 }
  0x13   : > { %2281 = shalt.err (!%p2278_p11)
}
  0x14   : > { %s2282_s26 = scalar_lea.vmem %s291_s16, 4096  ;;  %p2290_p1 = scmp.lt.s32.totalorder %s291_s16, %s291_s16 }
  0x15   : > { %p2283_p12 = scmp.ne.s32.totalorder %s291_s16, %s2282_s26  ;;  %p2291_p4 = scmp.lt.s32.totalorder %s2282_s26, %s2282_s26 }
  0x17   : > { %p2285_p13 = pnand %p2283_p12, %p2271_p7  ;;  %p2292_p3 = por %p2291_p4, %p2290_p1 }
  0x19   : > { %p2286_p0 = pneg %p2285_p13 }
  0x1b   : > { %p2293_p2 = pnand %p2292_p3, %p2286_p0 }
  0x1d   : > { %2296 = shalt.err (!%p2293_p2)
}
  0x1e   : > { %s2310_s27 = smov 128   ;;  %s2311_s28 = smov 8  }
  0x1f   : > { %2251 = dma.hbm_to_vmem [thread:$0]  (!%p2390_p5), %s2646_s4, 4096, %s291_s16, [#allocation3], %s2310_s27, %s2310_s27, %s2311_s28  }
  0x20   : > { %p2657_p6 = scmp.ne.s32.totalorder %s2655_s17, 0 }
  0x21   : > { %p2658_p8 = scmp.eq.s32.totalorder (!%p2657_p6), %s2377_s14, 0 }
  0x22   : > { %335 = sbr.rel (%p2657_p6) target bundleno = 3500 (0xdac), region = 60 }
  0x29   : > { %2302 = dma.done.wait (%p2658_p8), [#allocation3], 4096   ;;  %p2659_p7 = pmov %p2658_p8 }
  0x2a   : > { %p375_p2 = scmp.lt.s32.totalorder %s2377_s14, 1  ;;  %v2312_v0 = vmov 0.0   ;;  %vm2313_vm0 = vmmov 0   ;;  %v2314_v1 = vmov 0.0|0.0   ;;  %vm401_vm1 = vcmask 1043456   ;;  %v475_v4 = vld [vmem:[#allocation2] sm:$0xff] }
  0x2b   : > { %2304 = vsyncadd (%p2659_p7), [#allocation3], 4294963200  ;;  %2020 = vmatprep.subr.mxu1 %v2312_v0  ;;  %2022 = vmatprep.mubr.msk.f32.mxu1 %vm2313_vm0, %v2312_v0  ;;  %vm397_vm2 = vcmask 31744   ;;  %v389_v2 = vld [vmem:[%s2644_s2] sm:$0xf]  ;;  %v476_v5 = vld [vmem:[#allocation2 + $0x8] sm:$0xff] }
  0x2c   : > { %s2661_s14 = smov (!%p375_p2, %s2377_s14), 1  ;;  %2178 = vmatprep.subr.bf16.mxu0 %v2314_v1  ;;  %2044 = vmatprep.mubr.msk.f32.mxu0 %vm2313_vm0, %v2312_v0  ;;  %v2173_v6 = vpack.c.bf16 %v476_v5, %v475_v4  ;;  %v477_v7 = vld [vmem:[#allocation2 + $0x10] sm:$0xff]  ;;  %v478_v8 = vld [vmem:[#allocation2 + $0x18] sm:$0xff]  ;;  %v562_v10 = vld [vmem:[#allocation2 + $0x20] sm:$0xff]  ;;  %vm486_vm3 = vcmask 261120   ;;  %s2315_s23 = smov 4  }
  0x2d   : > { %s2424_s11 = sshll.u32 %s2661_s14, 3  ;;  %2021 = vmatpush3.msk.msra.mxu1 %vm401_vm1, %v389_v2  ;;  %v2176_v9 = vpack.c.bf16 %v478_v8, %v477_v7  ;;  %v563_v11 = vld [vmem:[#allocation2 + $0x28] sm:$0xff]  ;;  %v1884_v13 = vld [vmem:[%s2645_s3] ss:$0 sm:$0xff]  ;;  %v564_v17 = vld [vmem:[#allocation2 + $0x30] sm:$0xff]  ;;  %vm1795_vm4 = vcmask 64544  }
  0x2e   : > { %s378_s16 = scalar_lea.vmem %s2642_s0, %s2424_s11  ;;  %2172 = vmatprep.subr.bf16.mxu1 %v2314_v1  ;;  %v2179_v12 = vpack.c.bf16 %v563_v11, %v562_v10  ;;  %v565_v18 = vld [vmem:[#allocation2 + $0x38] sm:$0xff]  ;;  %v648_v20 = vld [vmem:[%s2648_s6] sm:$0xff]  ;;  %v649_v21 = vld [vmem:[%s2648_s6 + $0x8] sm:$0xff]  ;;  %s382_s14 = scalar_lea.vmem %s2643_s1, %s2424_s11 }
  0x2f   : > { %v2433_v3 = vld [vmem:[%s378_s16] sm:$0xff]  ;;  %v2182_v19 = vpack.c.bf16 %v565_v18, %v564_v17  ;;  %v2185_v22 = vpack.c.bf16 %v649_v21, %v648_v20  ;;  %v650_v28 = vld [vmem:[%s2648_s6 + $0x10] sm:$0xff]  ;;  %v651_v29 = vld [vmem:[%s2648_s6 + $0x18] sm:$0xff]  ;;  %s386_s26 = scalar_lea.vmem %s2652_s10, %s2424_s11 }
  0x30   : > { %2023 = vmatmul.mubr.msk.f32.vlgmr.msra.gmra.mrb[0].mxu1 %vm397_vm2, %v2433_v3  ;;  %2180 = vmatpush3.bf16.msra.mxu0 %v2179_v12  ;;  %v1887_v23 = vld [vmem:[%s2647_s5] ss:$0 sm:$0xff]  ;;  %v2188_v30 = vpack.c.bf16 %v651_v29, %v650_v28  ;;  %v1890_v31 = vld [vmem:[%s2647_s5 + $0x1] ss:$0 sm:$0xff]  ;;  %v1894_v36 = vld [vmem:[%s2644_s2 + $0x4] sm:$0xf] }
  0x31   : > { %2033 = vmatprep.mubr.msk.f32.mxu1 %vm2313_vm0, %v2312_v0  ;;  %2174 = vmatpush3.bf16.msra.mxu1 %v2173_v6  ;;  %v1892_v37 = vld [vmem:[%s2649_s7] ss:$0 sm:$0xff]  ;;  %v821_v39 = vld [vmem:[#allocation2 + $0x48] sm:$0xff]  ;;  %v822_v46 = vld [vmem:[#allocation2 + $0x50] sm:$0xff] }
  0x32   : > { %2175 = vmatprep.subr.bf16.mxu1 %v2314_v1  ;;  %2181 = vmatprep.subr.bf16.mxu0 %v2314_v1  ;;  %v820_v38 = vld [vmem:[#allocation2 + $0x40] sm:$0xff]  ;;  %v823_v47 = vld [vmem:[#allocation2 + $0x58] sm:$0xff]  ;;  %v908_v50 = vld [vmem:[#allocation2 + $0x68] sm:$0xff] }
  0x33   : > { %v388_v40 = vld [vmem:[%s382_s14] sm:$0xff]  ;;  %v2191_v44 = vpack.c.bf16 %v821_v39, %v820_v38  ;;  %v2194_v48 = vpack.c.bf16 %v823_v47, %v822_v46  ;;  %v909_v56 = vld [vmem:[#allocation2 + $0x70] sm:$0xff]  ;;  %v910_v57 = vld [vmem:[#allocation2 + $0x78] sm:$0xff] }
  0x34   : > { %2183 = vmatpush3.bf16.msra.mxu0 %v2182_v19  ;;  %v907_v49 = vld [vmem:[#allocation2 + $0x60] sm:$0xff]  ;;  %v2200_v58 = vpack.c.bf16 %v910_v57, %v909_v56  ;;  %v1906_v60 = vld [vmem:[%s2648_s6 + $0x28] sm:$0xff]  ;;  %v1907_v6 = vld [vmem:[%s2648_s6 + $0x30] sm:$0xff] }
  0x35   : > { %2177 = vmatpush3.bf16.msra.mxu1 %v2176_v9  ;;  %2058 = vmatprep.subr.mxu0 %v2312_v0  ;;  %v2197_v51 = vpack.c.bf16 %v908_v50, %v907_v49  ;;  %v1896_v52 = vld [vmem:[%s2645_s3 + $0x1] ss:$0 sm:$0xff]  ;;  %v1900_v62 = vld [vmem:[%s2647_s5 + $0x2] ss:$0 sm:$0xff]  ;;  %v1908_v7 = vld [vmem:[%s2648_s6 + $0x38] sm:$0xff] }
  0x36   : > { %2184 = vmatprep.subr.bf16.mxu1 %v2314_v1  ;;  %v1905_v59 = vld [vmem:[%s2648_s6 + $0x20] sm:$0xff]  ;;  %v2206_v8 = vpack.c.bf16 %v1908_v7, %v1907_v6  ;;  %v1168_v17 = vld [vmem:[#allocation2 + $0x88] sm:$0xff] }
  0x37   : > { %v2203_v61 = vpack.c.bf16 %v1906_v60, %v1905_v59  ;;  %v1903_v9 = vld [vmem:[%s2647_s5 + $0x3] ss:$0 sm:$0xff]  ;;  %v1918_v38 = vld [vmem:[%s2647_s5 + $0x4] ss:$0 sm:$0xff]  ;;  %v1921_v47 = vld [vmem:[%s2647_s5 + $0x5] ss:$0 sm:$0xff] }
  0x38   : > { %v1949_v59 = vld [vmem:[%s2651_s9] ss:$0 sm:$0xff]  ;;  %v1602_v6 = vld [vmem:[#allocation2 + $0xe8] sm:$0xff]  ;;  %v1932_v7 = vld [vmem:[%s2645_s3 + $0x3] ss:$0 sm:$0xff] }
 0x103   : > { %v471_v14 = vpop.f32.mrb[0].mxu1 }
 0x104   : > { %v472_v15 = vadd.f32 %v1884_v13, %v471_v14  ;;  %v2024_v16 = vpop.f32.mrb[1].mxu1  ;;  %v1912_v14 = vld [vmem:[%s2644_s2 + $0x8] sm:$0xf] }
 0x105   : > { %v1167_v16 = vld [vmem:[#allocation2 + $0x80] sm:$0xff] }
 0x106   : > { %2034 = vmatmul.mubr.msk.f32.vlgmr.msra.gmra.mrb[2].mxu1 %vm486_vm3, %v472_v15  ;;  %v1910_v15 = vld [vmem:[%s2649_s7 + $0x1] ss:$0 sm:$0xff]  ;;  %v2209_v21 = vpack.c.bf16 %v1168_v17, %v1167_v16 }
 0x107   : > { %2055 = vmatprep.mubr.msk.f32.mxu1 %vm2313_vm0, %v2312_v0  ;;  %2186 = vmatpush3.bf16.msra.mxu1 %v2185_v22 }
 0x108   : > { %2187 = vmatprep.subr.bf16.mxu1 %v2314_v1 }
 0x10b   : > { %2189 = vmatpush3.bf16.msra.mxu1 %v2188_v30 }
 0x10c   : > { %2196 = vmatprep.subr.bf16.mxu1 %v2314_v1 }
 0x1d9   : > { %v556_v24 = vpop.f32.mrb[2].mxu1 }
 0x1da   : > { %v557_v25 = vadd.f32 %v1887_v23, %v556_v24  ;;  %v2035_v26 = vpop.f32.mrb[3].mxu1  ;;  %v1169_v23 = vld [vmem:[#allocation2 + $0x90] sm:$0xff]  ;;  %v1170_v24 = vld [vmem:[#allocation2 + $0x98] sm:$0xff] }
 0x1db   : > { %v1254_v26 = vld [vmem:[#allocation2 + $0xa0] sm:$0xff] }
 0x1dc   : > { %v560_v27 = vmax.f32 %v557_v25, 0.0  ;;  %v2212_v25 = vpack.c.bf16 %v1170_v24, %v1169_v23  ;;  %v1944_v23 = vld [vmem:[%s2648_s6 + $0x78] sm:$0xff]  ;;  %v1939_v24 = vld [vmem:[%s2647_s5 + $0x7] ss:$0 sm:$0xff] }
 0x1de   : > { %2045 = vmatmul.mubr.msk.f32.vlgmr.msra.gmra.mrb[0].mxu0 %vm486_vm3, %v560_v27  ;;  %v1255_v27 = vld [vmem:[#allocation2 + $0xa8] sm:$0xff] }
 0x1df   : > { %2060 = vmatprep.mubr.msk.f32.mxu0 %vm2313_vm0, %v2312_v0  ;;  %2059 = vmatpush3.msk.msra.mxu0 %vm401_vm1, %v1894_v36  ;;  %v2215_v28 = vpack.c.bf16 %v1255_v27, %v1254_v26  ;;  %v1924_v36 = vld [vmem:[%s2648_s6 + $0x48] sm:$0xff] }
 0x1e0   : > { %2190 = vmatprep.subr.bf16.mxu0 %v2314_v1 }
 0x2b1   : > { %v643_v32 = vpop.f32.mrb[0].mxu0 }
 0x2b2   : > { %v644_v33 = vadd.f32 %v1890_v31, %v643_v32  ;;  %v2046_v34 = vpop.f32.mrb[1].mxu0  ;;  %v1256_v32 = vld [vmem:[#allocation2 + $0xb0] sm:$0xff] }
 0x2b4   : > { %v647_v35 = vmax.f32 %v644_v33, 0.0  ;;  %v1257_v33 = vld [vmem:[#allocation2 + $0xb8] sm:$0xff] }
 0x2b5   : > { %v2218_v34 = vpack.c.bf16 %v1257_v33, %v1256_v32  ;;  %v1948_v32 = vld [vmem:[%s2650_s8] ss:$0 sm:$0xff] }
 0x2b6   : > { %2056 = vmatmul.mubr.msk.f32.vlgmr.msra.gmra.mrb[4].mxu1 %vm486_vm3, %v647_v35  ;;  %v1923_v35 = vld [vmem:[%s2648_s6 + $0x40] sm:$0xff] }
 0x2b7   : > { %2082 = vmatprep.mubr.msk.f32.mxu1 %vm2313_vm0, %v2312_v0  ;;  %2198 = vmatpush3.bf16.msra.mxu1 %v2197_v51 }
 0x2b8   : > { %2199 = vmatprep.subr.bf16.mxu1 %v2314_v1 }
 0x2bb   : > { %2201 = vmatpush3.bf16.msra.mxu1 %v2200_v58 }
 0x2bc   : > { %2096 = vmatprep.subr.mxu1 %v2312_v0 }
 0x389   : > { %v728_v41 = vpop.f32.mrb[4].mxu1 }
 0x38a   : > { %v729_v42 = vadd.f32 %v1892_v37, %v728_v41  ;;  %v2057_v43 = vpop.f32.mrb[5].mxu1  ;;  %v2221_v37 = vpack.c.bf16 %v1924_v36, %v1923_v35 }
 0x38b   : > { %v1925_v43 = vld [vmem:[%s2648_s6 + $0x50] sm:$0xff] }
 0x38c   : > { %v2489_v45 = vadd.f32 %v729_v42, %v388_v40 }
 0x38e   : > { %2061 = vmatmul.mubr.msk.f32.vlgmr.msra.gmra.mrb[2].mxu0 %vm397_vm2, %v2489_v45 }
 0x38f   : > { %2192 = vmatpush3.bf16.msra.mxu0 %v2191_v44  ;;  %2071 = vmatprep.mubr.msk.f32.mxu0 %vm2313_vm0, %v2312_v0  ;;  %v1926_v44 = vld [vmem:[%s2648_s6 + $0x58] sm:$0xff] }
 0x390   : > { %2193 = vmatprep.subr.bf16.mxu0 %v2314_v1  ;;  %v2224_v46 = vpack.c.bf16 %v1926_v44, %v1925_v43 }
 0x393   : > { %2195 = vmatpush3.bf16.msra.mxu0 %v2194_v48 }
 0x394   : > { %2202 = vmatprep.subr.bf16.mxu0 %v2314_v1 }
 0x461   : > { %v815_v53 = vpop.f32.mrb[2].mxu0 }
 0x462   : > { %v816_v54 = vadd.f32 %v1896_v52, %v815_v53  ;;  %v2062_v55 = vpop.f32.mrb[3].mxu0  ;;  %v1930_v52 = vld [vmem:[%s2644_s2 + $0xc] sm:$0xf]  ;;  %v1928_v53 = vld [vmem:[%s2649_s7 + $0x2] ss:$0 sm:$0xff] }
 0x463   : > { %v1515_v55 = vld [vmem:[#allocation2 + $0xc8] sm:$0xff] }
 0x464   : > { %2072 = vmatmul.mubr.msk.f32.vlgmr.msra.gmra.mrb[4].mxu0 %vm486_vm3, %v816_v54  ;;  %v1514_v54 = vld [vmem:[#allocation2 + $0xc0] sm:$0xff] }
 0x465   : > { %2093 = vmatprep.mubr.msk.f32.mxu0 %vm2313_vm0, %v2312_v0  ;;  %2204 = vmatpush3.bf16.msra.mxu0 %v2203_v61  ;;  %v2227_v60 = vpack.c.bf16 %v1515_v55, %v1514_v54 }
 0x466   : > { %2205 = vmatprep.subr.bf16.mxu0 %v2314_v1 }
 0x469   : > { %2207 = vmatpush3.bf16.msra.mxu0 %v2206_v8 }
 0x46a   : > { %2214 = vmatprep.subr.bf16.mxu0 %v2314_v1 }
 0x537   : > { %v901_v63 = vpop.f32.mrb[4].mxu0 }
 0x538   : > { %v902_v2 = vadd.f32 %v1900_v62, %v901_v63  ;;  %v2073_v4 = vpop.f32.mrb[5].mxu0  ;;  %v1516_v63 = vld [vmem:[#allocation2 + $0xd0] sm:$0xff] }
 0x53a   : > { %v905_v5 = vmax.f32 %v902_v2, 0.0  ;;  %v1517_v2 = vld [vmem:[#allocation2 + $0xd8] sm:$0xff] }
 0x53b   : > { %v2230_v4 = vpack.c.bf16 %v1517_v2, %v1516_v63 }
 0x53c   : > { %2083 = vmatmul.mubr.msk.f32.vlgmr.msra.gmra.mrb[6].mxu1 %vm486_vm3, %v905_v5  ;;  %v1601_v5 = vld [vmem:[#allocation2 + $0xe0] sm:$0xff] }
 0x53d   : > { %2098 = vmatprep.mubr.msk.f32.mxu1 %vm2313_vm0, %v2312_v0  ;;  %2097 = vmatpush3.msk.msra.mxu1 %vm401_vm1, %v1912_v14  ;;  %v1941_v14 = vld [vmem:[%s2648_s6 + $0x60] sm:$0xff] }
 0x53e   : > { %2208 = vmatprep.subr.bf16.mxu1 %v2314_v1 }
 0x60f   : > { %v988_v10 = vpop.f32.mrb[6].mxu1 }
 0x610   : > { %v989_v11 = vadd.f32 %v1903_v9, %v988_v10  ;;  %v2084_v12 = vpop.f32.mrb[7].mxu1 }
 0x611   : > { %v1604_v12 = vld [vmem:[#allocation2 + $0xf8] sm:$0xff] }
 0x612   : > { %v992_v13 = vmax.f32 %v989_v11, 0.0  ;;  %v1603_v11 = vld [vmem:[#allocation2 + $0xf0] sm:$0xff] }
 0x614   : > { %2094 = vmatmul.mubr.msk.f32.vlgmr.msra.gmra.mrb[6].mxu0 %vm486_vm3, %v992_v13  ;;  %v2236_v13 = vpack.c.bf16 %v1604_v12, %v1603_v11 }
 0x615   : > { %2120 = vmatprep.mubr.msk.f32.mxu0 %vm2313_vm0, %v2312_v0  ;;  %2216 = vmatpush3.bf16.msra.mxu0 %v2215_v28 }
 0x616   : > { %2217 = vmatprep.subr.bf16.mxu0 %v2314_v1 }
 0x619   : > { %2219 = vmatpush3.bf16.msra.mxu0 %v2218_v34 }
 0x61a   : > { %2134 = vmatprep.subr.mxu0 %v2312_v0 }
 0x6e7   : > { %v1075_v18 = vpop.f32.mrb[6].mxu0 }
 0x6e8   : > { %v1076_v19 = vadd.f32 %v1910_v15, %v1075_v18  ;;  %v2095_v20 = vpop.f32.mrb[7].mxu0  ;;  %v1942_v15 = vld [vmem:[%s2648_s6 + $0x68] sm:$0xff] }
 0x6e9   : > { %v2239_v16 = vpack.c.bf16 %v1942_v15, %v1941_v14 }
 0x6ea   : > { %v2540_v22 = vadd.f32 %v1076_v19, %v2433_v3  ;;  %v1914_v3 = vld [vmem:[%s2645_s3 + $0x2] ss:$0 sm:$0xff] }
 0x6ec   : > { %2099 = vmatmul.mubr.msk.f32.vlgmr.msra.gmra.mrb[8].mxu1 %vm397_vm2, %v2540_v22 }
 0x6ed   : > { %2210 = vmatpush3.bf16.msra.mxu1 %v2209_v21  ;;  %2109 = vmatprep.mubr.msk.f32.mxu1 %vm2313_vm0, %v2312_v0  ;;  %v1943_v21 = vld [vmem:[%s2648_s6 + $0x70] sm:$0xff] }
 0x6ee   : > { %2211 = vmatprep.subr.bf16.mxu1 %v2314_v1 }
 0x6f1   : > { %2213 = vmatpush3.bf16.msra.mxu1 %v2212_v25 }
 0x6f2   : > { %2220 = vmatprep.subr.bf16.mxu1 %v2314_v1 }
 0x7bf   : > { %v1162_v29 = vpop.f32.mrb[8].mxu1 }
 0x7c0   : > { %v1163_v30 = vadd.f32 %v1914_v3, %v1162_v29  ;;  %v2100_v31 = vpop.f32.mrb[9].mxu1  ;;  %v1946_v3 = vld [vmem:[%s2649_s7 + $0x3] ss:$0 sm:$0xff] }
 0x7c2   : > { %2110 = vmatmul.mubr.msk.f32.vlgmr.msra.gmra.mrb[10].mxu1 %vm486_vm3, %v1163_v30 }
 0x7c3   : > { %2131 = vmatprep.mubr.msk.f32.mxu1 %vm2313_vm0, %v2312_v0  ;;  %2222 = vmatpush3.bf16.msra.mxu1 %v2221_v37 }
 0x7c4   : > { %2223 = vmatprep.subr.bf16.mxu1 %v2314_v1 }
 0x7c7   : > { %2225 = vmatpush3.bf16.msra.mxu1 %v2224_v46 }
 0x7c8   : > { %2232 = vmatprep.subr.bf16.mxu1 %v2314_v1 }
 0x895   : > { %v1248_v39 = vpop.f32.mrb[10].mxu1 }
 0x896   : > { %v1249_v40 = vadd.f32 %v1918_v38, %v1248_v39  ;;  %v2111_v41 = vpop.f32.mrb[11].mxu1 }
 0x898   : > { %v1252_v42 = vmax.f32 %v1249_v40, 0.0 }
 0x89a   : > { %2121 = vmatmul.mubr.msk.f32.vlgmr.msra.gmra.mrb[8].mxu0 %vm486_vm3, %v1252_v42 }
 0x89b   : > { %2136 = vmatprep.mubr.msk.f32.mxu0 %vm2313_vm0, %v2312_v0  ;;  %2135 = vmatpush3.msk.msra.mxu0 %vm401_vm1, %v1930_v52 }
 0x89c   : > { %2226 = vmatprep.subr.bf16.mxu0 %v2314_v1 }
 0x96d   : > { %v1335_v48 = vpop.f32.mrb[8].mxu0 }
 0x96e   : > { %v1336_v49 = vadd.f32 %v1921_v47, %v1335_v48  ;;  %v2122_v50 = vpop.f32.mrb[9].mxu0 }
 0x970   : > { %v1339_v51 = vmax.f32 %v1336_v49, 0.0 }
 0x972   : > { %2132 = vmatmul.mubr.msk.f32.vlgmr.msra.gmra.mrb[12].mxu1 %vm486_vm3, %v1339_v51 }
 0x973   : > { %2158 = vmatprep.mubr.msk.f32.mxu1 %vm2313_vm0, %v2312_v0 }
 0xa45   : > { %v1422_v56 = vpop.f32.mrb[12].mxu1 }
 0xa46   : > { %v1423_v57 = vadd.f32 %v1928_v53, %v1422_v56  ;;  %v2133_v58 = vpop.f32.mrb[13].mxu1 }
 0xa48   : > { %v1426_v61 = vadd.f32 %v1423_v57, %v2489_v45  ;;  %v2233_v45 = vpack.c.bf16 %v1602_v6, %v1601_v5 }
 0xa4a   : > { %2137 = vmatmul.mubr.msk.f32.vlgmr.msra.gmra.mrb[10].mxu0 %vm397_vm2, %v1426_v61  ;;  %v1790_v62 = vmul.f32 %v1949_v59, %v1426_v61  ;;  %2234 = vmatpush3.bf16.msra.mxu1 %v2233_v45 }
 0xa4b   : > { %2228 = vmatpush3.bf16.msra.mxu0 %v2227_v60  ;;  %2147 = vmatprep.mubr.msk.f32.mxu0 %vm2313_vm0, %v2312_v0 }
 0xa4c   : > { %1792 = vrot.lane.b32.xlu0 %v1790_v62, %s2315_s23  ;;  %2229 = vmatprep.subr.bf16.mxu0 %v2314_v1 }
 0xa4d   : > { %2235 = vmatprep.subr.bf16.mxu1 %v2314_v1 }
 0xa4e   : > { %2237 = vmatpush3.bf16.msra.mxu1 %v2236_v13 }
 0xa4f   : > { %2231 = vmatpush3.bf16.msra.mxu0 %v2230_v4 }
 0xa50   : > { %2238 = vmatprep.subr.bf16.mxu0 %v2314_v1 }
 0xabe   : > { %v1793_v35 = vpop.permute.xlu0 %1792 }
 0xb1d   : > { %v1509_v8 = vpop.f32.mrb[10].mxu0 }
 0xb1e   : > { %v1510_v9 = vadd.f32 %v1932_v7, %v1509_v8  ;;  %v2138_v10 = vpop.f32.mrb[11].mxu0 }
 0xb20   : > { %2148 = vmatmul.mubr.msk.f32.vlgmr.msra.gmra.mrb[12].mxu0 %vm486_vm3, %v1510_v9 }
 0xb21   : > { %2169 = vmatprep.mubr.msk.f32.mxu0 %vm2313_vm0, %v2312_v0  ;;  %2240 = vmatpush3.bf16.msra.mxu0 %v2239_v16  ;;  %v1936_v0 = vld [vmem:[%s2647_s5 + $0x6] ss:$0 sm:$0xff] }
 0xb22   : > { %2241 = vmatprep.subr.bf16.mxu0 %v2314_v1  ;;  %v2242_v1 = vpack.c.bf16 %v1944_v23, %v1943_v21 }
 0xb25   : > { %2243 = vmatpush3.bf16.msra.mxu0 %v2242_v1 }
 0xbf3   : > { %v1595_v17 = vpop.f32.mrb[12].mxu0 }
 0xbf4   : > { %v1596_v18 = vadd.f32 %v1936_v0, %v1595_v17  ;;  %v2149_v19 = vpop.f32.mrb[13].mxu0 }
 0xbf6   : > { %v1599_v20 = vmax.f32 %v1596_v18, 0.0 }
 0xbf8   : > { %2159 = vmatmul.mubr.msk.f32.vlgmr.msra.gmra.mrb[14].mxu1 %vm486_vm3, %v1599_v20 }
 0xccb   : > { %v1682_v25 = vpop.f32.mrb[14].mxu1 }
 0xccc   : > { %v1683_v26 = vadd.f32 %v1939_v24, %v1682_v25  ;;  %v2160_v27 = vpop.f32.mrb[15].mxu1 }
 0xcce   : > { %v1686_v28 = vmax.f32 %v1683_v26, 0.0 }
 0xcd0   : > { %2170 = vmatmul.mubr.msk.f32.vlgmr.msra.gmra.mrb[14].mxu0 %vm486_vm3, %v1686_v28 }
 0xda3   : > { %v1769_v29 = vpop.f32.mrb[14].mxu0 }
 0xda4   : > { %v1770_v30 = vadd.f32 %v1946_v3, %v1769_v29  ;;  %v2171_v31 = vpop.f32.mrb[15].mxu0 }
 0xda6   : > { %v1773_v33 = vadd.f32 %v1770_v30, %v2540_v22 }
 0xda8   : > { %v1781_v34 = vmul.f32 %v1948_v32, %v1773_v33 }
 0xdaa   : > { %1782 = vst.msk [vmem:[%s386_s26] sm:$0xff] %vm397_vm2, %v1781_v34 }
 0xdab   : > { %1796 = vst.msk [vmem:[%s386_s26] sm:$0xff] %vm1795_vm4, %v1793_v35 }
 0xdac PF: > { %s21_s13 = sadd.s32 1, %s2307_s13  }
 0xdad   : > { %p18_p3 = scmp.ge.s32.totalorder %s21_s13, 4  }
 0xdaf   :  { %20 = sbr.rel (!%p18_p3) target bundleno = 1 (0x1), region = 124 }
 0xdb6   :  { %1816 = vsyncpa [#allocation3], 1 }
 0xdb7   :  { %1818 = vsyncpa [#allocation3 + $0x1], 1 }

</bundles_post_ra>
